<compile_context>
chip_gen: v5e
topology: v5e:2x2
jax: 0.10.0
libtpu: 0.0.40
codegen_flags: <defaults>
</compile_context>

<pallas_src>
import jax
import jax.numpy as jnp
from jax.experimental import pallas as pl
from jax.experimental.pallas import tpu as pltpu


def _softplus(x):
    # Matches F.softplus (beta=1): log(1 + exp(x)), numerically stable.
    return jnp.maximum(x, 0.0) + jnp.log1p(jnp.exp(-jnp.abs(x)))


def _encoder_kernel(x_ref, w0_ref, w1_ref, wl_ref, b_ref, eps_ref, out_ref):
    """One batch tile: x (BT, IN) -> packed [z | means | vars | 0-pad] (BT, OW)."""
    h0 = w0_ref.shape[1]
    h1 = w1_ref.shape[1]
    k = eps_ref.shape[1]
    bt = x_ref.shape[0]
    out_w = out_ref.shape[1]

    # Hidden layer 0: Linear + ReLU (bf16 operands, f32 accumulate, f32 epilogue).
    h = jnp.dot(x_ref[...], w0_ref[...], preferred_element_type=jnp.float32)
    h = jnp.maximum(h + b_ref[0:1, :h0], 0.0)

    # Hidden layer 1: Linear + ReLU.
    h = jnp.dot(h.astype(w1_ref.dtype), w1_ref[...],
                preferred_element_type=jnp.float32)
    h = jnp.maximum(h + b_ref[1:2, :h1], 0.0)

    # Single fused head matmul: (BT, H1) @ (H1, 2K) -> (BT, 2K).
    p = jnp.dot(h.astype(wl_ref.dtype), wl_ref[...],
                preferred_element_type=jnp.float32)
    p = p + b_ref[2:3, :2 * k]

    means = p[:, :k]                 # cheap lane slices of the 32-wide result
    vars_ = _softplus(p[:, k:])

    # rsample: z = mean + std * eps.
    z = means + jnp.sqrt(vars_) * eps_ref[...]

    # Single lane-dense packed store: [z | means | vars | zeros].
    pieces = [z, means, vars_]
    pad = out_w - 3 * k
    if pad > 0:
        pieces.append(jnp.zeros((bt, pad), jnp.float32))
    out_ref[...] = jnp.concatenate(pieces, axis=-1).astype(out_ref.dtype)


def pack_params(params, output_size, matmul_dtype=jnp.bfloat16):
    """Pack raw per-layer params into the kernel's fused buffers."""
    w0, b0, w1, b1, wl, bl = params
    k = output_size
    hmax = max(w0.shape[1], w1.shape[1], 2 * k)

    def pad(b):
        return jnp.pad(b, (0, hmax - b.shape[0]))

    biases = jnp.stack([pad(b0), pad(b1), pad(bl)], axis=0).astype(jnp.float32)
    return (w0.astype(matmul_dtype), w1.astype(matmul_dtype),
            wl.astype(matmul_dtype), biases)


def mlp_multi_gaussian_encoder(x, params, output_size, *, eps=None, key=None,
                               batch_tile=None, matmul_dtype=jnp.bfloat16):
    """x: (B, input_size). Returns (z, z_means, z_vars), each (B, output_size)."""
    w0, w1, wl, biases = pack_params(params, output_size, matmul_dtype)
    B, IN = x.shape
    K = output_size
    H0 = w0.shape[1]
    H1 = w1.shape[1]

    if eps is None:
        if key is None:
            key = jax.random.PRNGKey(0)
        eps = jax.random.normal(key, (B, K), jnp.float32)

    # Single batch tile by default: this kernel is overhead/DMA bound, so fewer
    # grid steps win on 1-TC chips (v5e/v6e). On v7x pass batch_tile=B//2.
    bt = B if batch_tile is None else min(batch_tile, B)
    assert B % bt == 0, "batch must be divisible by the batch tile"
    assert bt == B or bt % 16 == 0, "bf16 sublane tile is (16,128)"

    # Lane-dense output slab width (multiple of 128 lanes).
    out_w = max(128, ((3 * K + 127) // 128) * 128)

    x_mm = x.astype(matmul_dtype)

    # Advisory cost estimate so XLA schedules this call sensibly.
    flops = int(2 * B * (IN * H0 + H0 * H1 + H1 * 2 * K) + 8 * B * K)
    transcendentals = int(3 * B * K)  # exp + log1p + sqrt per element
    bytes_accessed = int(
        2 * (x_mm.size + w0.size + w1.size + wl.size)
        + 4 * (biases.size + eps.size + B * out_w))
    cost = pl.CostEstimate(flops=flops, transcendentals=transcendentals,
                           bytes_accessed=bytes_accessed)

    packed = pl.pallas_call(
        _encoder_kernel,
        out_shape=jax.ShapeDtypeStruct((B, out_w), jnp.float32),
        grid=(B // bt,),
        in_specs=[
            pl.BlockSpec((bt, IN), lambda i: (i, 0)),            # x (batch-tiled)
            pl.BlockSpec((IN, H0), lambda i: (0, 0)),            # w0 (resident)
            pl.BlockSpec((H0, H1), lambda i: (0, 0)),            # w1 (resident)
            pl.BlockSpec((H1, 2 * K), lambda i: (0, 0)),         # fused head weight
            pl.BlockSpec(tuple(biases.shape), lambda i: (0, 0)),  # packed biases
            pl.BlockSpec((bt, K), lambda i: (i, 0)),              # eps (batch-tiled)
        ],
        out_specs=pl.BlockSpec((bt, out_w), lambda i: (i, 0)),    # packed [z|m|v|pad]
        compiler_params=pltpu.CompilerParams(
            dimension_semantics=("parallel",),   # batch tiles are independent
        ),
        cost_estimate=cost,
    )(x_mm, w0, w1, wl, biases, eps)

    z = packed[:, :K]
    z_means = packed[:, K:2 * K]
    z_vars = packed[:, 2 * K:3 * K]
    return z, z_means, z_vars


def init_params(key, input_size, hidden_sizes, output_size,
                init_w=0.003, b_init_value=0.1):
    """Deterministic init mirroring the PyTorch module's __init__.

    fanin_init: uniform(-1/sqrt(fan_in), 1/sqrt(fan_in)); hidden bias = 0.1;
    last layer weight & bias ~ uniform(-init_w, init_w).
    Weights returned already transposed to (in, out); biases 1-D (out,).
    """
    params = []
    in_size = input_size
    keys = jax.random.split(key, len(hidden_sizes) + 2)
    for i, next_size in enumerate(hidden_sizes):
        bound = 1.0 / jnp.sqrt(jnp.float32(in_size))
        w = jax.random.uniform(keys[i], (in_size, next_size), jnp.float32,
                               -bound, bound)
        b = jnp.full((next_size,), b_init_value, jnp.float32)
        params += [w, b]
        in_size = next_size
    # last_fc produces 2*output_size (information bottleneck)
    out_dim = 2 * output_size
    wl = jax.random.uniform(keys[-2], (in_size, out_dim), jnp.float32,
                            -init_w, init_w)
    bl = jax.random.uniform(keys[-1], (out_dim,), jnp.float32, -init_w, init_w)
    params += [wl, bl]
    return tuple(params)


def reference_forward(x, params, output_size, matmul_dtype=jnp.bfloat16):
    """Pure-JAX reference using the same bf16 matmul operands as the kernel."""
    w0, b0, w1, b1, wl, bl = params
    mt = matmul_dtype
    h = jnp.maximum(
        jnp.dot(x.astype(mt), w0.astype(mt),
                preferred_element_type=jnp.float32) + b0, 0.0)
    h = jnp.maximum(
        jnp.dot(h.astype(mt), w1.astype(mt),
                preferred_element_type=jnp.float32) + b1, 0.0)
    p = jnp.dot(h.astype(mt), wl.astype(mt),
                preferred_element_type=jnp.float32) + bl
    means = p[:, :output_size]
    vars_ = jax.nn.softplus(p[:, output_size:])
    return means, vars_


if __name__ == "__main__":
    key = jax.random.PRNGKey(0)
    k_param, k_x, k_eps = jax.random.split(key, 3)

    # MXU / lane-friendly (but still small) shapes.
    batch = 256
    input_size = 128
    hidden_sizes = (128, 128)
    output_size = 16

    params = init_params(k_param, input_size, hidden_sizes, output_size)
    x = jax.random.normal(k_x, (batch, input_size), jnp.float32)
    eps = jax.random.normal(k_eps, (batch, output_size), jnp.float32)

    z, z_means, z_vars = mlp_multi_gaussian_encoder(
        x, params, output_size, eps=eps)
    jax.block_until_ready((z, z_means, z_vars))

    # Validate against the pure-JAX reference (same bf16 matmul operands).
    m_ref, v_ref = reference_forward(x, params, output_size)
    z_ref = m_ref + jnp.sqrt(v_ref) * eps
    assert jnp.allclose(z_means, m_ref, atol=2e-3, rtol=2e-3), "means mismatch"
    assert jnp.allclose(z_vars, v_ref, atol=2e-3, rtol=2e-3), "vars mismatch"
    assert jnp.allclose(z, z_ref, atol=3e-3, rtol=3e-3), "z mismatch"
    assert bool(jnp.all(z_vars > 0.0))
    assert bool(jnp.all(jnp.isfinite(z)))

    print("KERNEL_OK")
</pallas_src>

<mosaic_0001>
module attributes {stable_mosaic.version = 11 : i64} {
  func.func @_encoder_kernel(%arg0: i32, %arg1: memref<256x128xbf16, #tpu.memory_space<vmem>>, %arg2: memref<128x128xbf16, #tpu.memory_space<vmem>>, %arg3: memref<128x128xbf16, #tpu.memory_space<vmem>>, %arg4: memref<128x32xbf16, #tpu.memory_space<vmem>>, %arg5: memref<3x128xf32, #tpu.memory_space<vmem>>, %arg6: memref<256x16xf32, #tpu.memory_space<vmem>>, %arg7: memref<256x128xf32, #tpu.memory_space<vmem>>) attributes {dimension_semantics = [#tpu.dimension_semantics<parallel>], iteration_bounds = array<i64: 1>, scalar_prefetch = 0 : i64, scratch_operands = 0 : i64, tpu.core_type = #tpu.core_type<tc>, window_params = [{transform_indices = @transform_0, window_bounds = array<i64: 256, 128>}, {pipeline_mode = #tpu.pipeline_mode<synchronous>, transform_indices = @transform_1, window_bounds = array<i64: 128, 128>}, {pipeline_mode = #tpu.pipeline_mode<synchronous>, transform_indices = @transform_2, window_bounds = array<i64: 128, 128>}, {pipeline_mode = #tpu.pipeline_mode<synchronous>, transform_indices = @transform_3, window_bounds = array<i64: 128, 32>}, {pipeline_mode = #tpu.pipeline_mode<synchronous>, transform_indices = @transform_4, window_bounds = array<i64: 3, 128>}, {transform_indices = @transform_5, window_bounds = array<i64: 256, 16>}, {transform_indices = @transform_6, window_bounds = array<i64: 256, 128>}]} {
    %c0 = arith.constant 0 : index
    %c0_0 = arith.constant 0 : index
    %0 = vector.load %arg1[%c0, %c0_0] : memref<256x128xbf16, #tpu.memory_space<vmem>>, vector<256x128xbf16>
    %c0_1 = arith.constant 0 : index
    %c0_2 = arith.constant 0 : index
    %1 = vector.load %arg2[%c0_1, %c0_2] : memref<128x128xbf16, #tpu.memory_space<vmem>>, vector<128x128xbf16>
    %cst = arith.constant dense<0.000000e+00> : vector<256x128xf32>
    %2 = tpu.matmul %0, %1, %cst {dimension_numbers = #tpu.dot_dimension_numbers<[1], [0], [0], [1], [0, 0, 1, 1], [], []>} : vector<256x128xbf16>, vector<128x128xbf16>, vector<256x128xf32> -> vector<256x128xf32>
    %c0_3 = arith.constant 0 : index
    %c0_4 = arith.constant 0 : index
    %3 = vector.load %arg5[%c0_3, %c0_4] : memref<3x128xf32, #tpu.memory_space<vmem>>, vector<1x128xf32>
    %4 = vector.broadcast %3 : vector<1x128xf32> to vector<256x128xf32>
    %5 = arith.addf %2, %4 : vector<256x128xf32>
    %cst_5 = arith.constant 0.000000e+00 : f32
    %6 = vector.broadcast %cst_5 : f32 to vector<256x128xf32>
    %7 = arith.maximumf %5, %6 : vector<256x128xf32>
    %8 = arith.truncf %7 : vector<256x128xf32> to vector<256x128xbf16>
    %c0_6 = arith.constant 0 : index
    %c0_7 = arith.constant 0 : index
    %9 = vector.load %arg3[%c0_6, %c0_7] : memref<128x128xbf16, #tpu.memory_space<vmem>>, vector<128x128xbf16>
    %cst_8 = arith.constant dense<0.000000e+00> : vector<256x128xf32>
    %10 = tpu.matmul %8, %9, %cst_8 {dimension_numbers = #tpu.dot_dimension_numbers<[1], [0], [0], [1], [0, 0, 1, 1], [], []>} : vector<256x128xbf16>, vector<128x128xbf16>, vector<256x128xf32> -> vector<256x128xf32>
    %c1 = arith.constant 1 : index
    %c0_9 = arith.constant 0 : index
    %11 = vector.load %arg5[%c1, %c0_9] : memref<3x128xf32, #tpu.memory_space<vmem>>, vector<1x128xf32>
    %12 = vector.broadcast %11 : vector<1x128xf32> to vector<256x128xf32>
    %13 = arith.addf %10, %12 : vector<256x128xf32>
    %cst_10 = arith.constant 0.000000e+00 : f32
    %14 = vector.broadcast %cst_10 : f32 to vector<256x128xf32>
    %15 = arith.maximumf %13, %14 : vector<256x128xf32>
    %16 = arith.truncf %15 : vector<256x128xf32> to vector<256x128xbf16>
    %c0_11 = arith.constant 0 : index
    %c0_12 = arith.constant 0 : index
    %17 = vector.load %arg4[%c0_11, %c0_12] : memref<128x32xbf16, #tpu.memory_space<vmem>>, vector<128x32xbf16>
    %cst_13 = arith.constant dense<0.000000e+00> : vector<256x32xf32>
    %18 = tpu.matmul %16, %17, %cst_13 {dimension_numbers = #tpu.dot_dimension_numbers<[1], [0], [0], [1], [0, 0, 1, 1], [], []>} : vector<256x128xbf16>, vector<128x32xbf16>, vector<256x32xf32> -> vector<256x32xf32>
    %c2 = arith.constant 2 : index
    %c0_14 = arith.constant 0 : index
    %19 = vector.load %arg5[%c2, %c0_14] : memref<3x128xf32, #tpu.memory_space<vmem>>, vector<1x32xf32>
    %20 = vector.broadcast %19 : vector<1x32xf32> to vector<256x32xf32>
    %21 = arith.addf %18, %20 : vector<256x32xf32>
    %22 = vector.extract_strided_slice %21 {offsets = [0, 0], sizes = [256, 16], strides = [1, 1]} : vector<256x32xf32> to vector<256x16xf32>
    %23 = vector.extract_strided_slice %21 {offsets = [0, 16], sizes = [256, 16], strides = [1, 1]} : vector<256x32xf32> to vector<256x16xf32>
    %cst_15 = arith.constant 0.000000e+00 : f32
    %24 = vector.broadcast %cst_15 : f32 to vector<256x16xf32>
    %25 = arith.maximumf %23, %24 : vector<256x16xf32>
    %26 = math.absf %23 : vector<256x16xf32>
    %cst_16 = arith.constant 0.000000e+00 : f32
    %27 = vector.broadcast %cst_16 : f32 to vector<256x16xf32>
    %28 = arith.subf %27, %26 : vector<256x16xf32>
    %29 = math.exp %28 : vector<256x16xf32>
    %30 = math.log1p %29 : vector<256x16xf32>
    %31 = arith.addf %25, %30 : vector<256x16xf32>
    %32 = math.sqrt %31 : vector<256x16xf32>
    %c0_17 = arith.constant 0 : index
    %c0_18 = arith.constant 0 : index
    %33 = vector.load %arg6[%c0_17, %c0_18] : memref<256x16xf32, #tpu.memory_space<vmem>>, vector<256x16xf32>
    %34 = arith.mulf %32, %33 : vector<256x16xf32>
    %35 = arith.addf %22, %34 : vector<256x16xf32>
    %cst_19 = arith.constant 0.000000e+00 : f32
    %36 = vector.broadcast %cst_19 : f32 to vector<256x80xf32>
    %37 = tpu.concatenate %35, %22, %31, %36 in 1 : vector<256x16xf32>, vector<256x16xf32>, vector<256x16xf32>, vector<256x80xf32> -> vector<256x128xf32>
    %c0_20 = arith.constant 0 : index
    %c0_21 = arith.constant 0 : index
    %38 = vector.load %arg7[%c0_20, %c0_21] : memref<256x128xf32, #tpu.memory_space<vmem>>, vector<256x128xf32>
    tpu.vector_store %arg7[%c0_20, %c0_21], %37 {strides = array<i32>} : memref<256x128xf32, #tpu.memory_space<vmem>>, vector<256x128xf32>,
    return
  }
  func.func @transform_0(%arg0: i32) -> (i32, i32) {
    %c0_i32 = arith.constant 0 : i32
    %c0_i32_0 = arith.constant 0 : i32
    return %arg0, %c0_i32 : i32, i32
  }
  func.func @transform_1(%arg0: i32) -> (i32, i32) {
    %c0_i32 = arith.constant 0 : i32
    %c0_i32_0 = arith.constant 0 : i32
    %c0_i32_1 = arith.constant 0 : i32
    return %c0_i32, %c0_i32_0 : i32, i32
  }
  func.func @transform_2(%arg0: i32) -> (i32, i32) {
    %c0_i32 = arith.constant 0 : i32
    %c0_i32_0 = arith.constant 0 : i32
    %c0_i32_1 = arith.constant 0 : i32
    return %c0_i32, %c0_i32_0 : i32, i32
  }
  func.func @transform_3(%arg0: i32) -> (i32, i32) {
    %c0_i32 = arith.constant 0 : i32
    %c0_i32_0 = arith.constant 0 : i32
    %c0_i32_1 = arith.constant 0 : i32
    return %c0_i32, %c0_i32_0 : i32, i32
  }
  func.func @transform_4(%arg0: i32) -> (i32, i32) {
    %c0_i32 = arith.constant 0 : i32
    %c0_i32_0 = arith.constant 0 : i32
    %c0_i32_1 = arith.constant 0 : i32
    return %c0_i32, %c0_i32_0 : i32, i32
  }
  func.func @transform_5(%arg0: i32) -> (i32, i32) {
    %c0_i32 = arith.constant 0 : i32
    %c0_i32_0 = arith.constant 0 : i32
    return %arg0, %c0_i32 : i32, i32
  }
  func.func @transform_6(%arg0: i32) -> (i32, i32) {
    %c0_i32 = arith.constant 0 : i32
    %c0_i32_0 = arith.constant 0 : i32
    return %arg0, %c0_i32 : i32, i32
  }
}

</mosaic_0001>

<bundles_post_ra>
// kernel: tpu_custom_call.1
= control target key start
LH: loop header
LB: loop body
LE: loop exit
PB: predicated region body
PF: predicated region fallthrough
CT: control target
= control target key end

     0   :  { %s4706_s0 = inlined_call_operand.vmem [shape: bf16[256,128], index: 0, kind: input, shape index: {}]   ;;  %s4707_s1 = inlined_call_operand.vmem [shape: bf16[128,128], index: 1, kind: input, shape index: {}]   ;;  %s4708_s2 = inlined_call_operand.vmem [shape: bf16[128,128], index: 2, kind: input, shape index: {}]   ;;  %s4709_s3 = inlined_call_operand.vmem [shape: bf16[128,32], index: 3, kind: input, shape index: {}]   ;;  %s4710_s4 = inlined_call_operand.vmem [shape: f32[3,128], index: 4, kind: input, shape index: {}]   ;;  %s4711_s5 = inlined_call_operand.vmem [shape: f32[256,16], index: 5, kind: input, shape index: {}]   ;;  %s4712_s6 = inlined_call_operand.hbm [shape: f32[256,128], index: 6, kind: output, shape index: {}]  }
   0x1   :  { %v2517_v0 = vld [vmem:[%s4707_s1 + $0x38] sm:$0xff]  ;;  %v2516_v1 = vld [vmem:[%s4707_s1 + $0x30] sm:$0xff] }
   0x2   :  { %218 = vmatpush.bf16.msra.mxu0 %v2517_v0  ;;  %2534 = vmatpush.bf16.msra.mxu3 %v2517_v0 }
   0x3   :  { %11 = vsyncpa [#allocation3], 0  ;;  %v2515_v2 = vld [vmem:[%s4707_s1 + $0x28] sm:$0xff]  ;;  %v2514_v3 = vld [vmem:[%s4707_s1 + $0x20] sm:$0xff]  ;;  %s2786_s13 = smov 112   ;;  %s2322_s18 = sshll.u32 %s4712_s6, 4  ;;  %s2323_s18 = int_to_ptr.hbm [resolvable:$true] %s2322_s18 }
   0x4   :  { %v2513_v4 = vld [vmem:[%s4707_s1 + $0x18] sm:$0xff]  ;;  %v2512_v5 = vld [vmem:[%s4707_s1 + $0x10] sm:$0xff]  ;;  %v2511_v6 = vld [vmem:[%s4707_s1 + $0x8] sm:$0xff]  ;;  %s2788_s19 = smov 128   ;;  %s2789_s20 = smov 8  }
   0x5   :  { %v2510_v7 = vld [vmem:[%s4707_s1] sm:$0xff]  ;;  %v2495_v10 = vld [vmem:[%s4706_s0 + $0x8] sm:$0xff]  ;;  %v2496_v12 = vld [vmem:[%s4706_s0 + $0x10] sm:$0xff] }
   0x6   :  { %219 = vmatpush.bf16.msra.mxu0 %v2516_v1  ;;  %2535 = vmatpush.bf16.msra.mxu3 %v2516_v1  ;;  %v2494_v8 = vld [vmem:[%s4706_s0] sm:$0xff]  ;;  %v2507_v11 = vld [vmem:[%s4706_s0 + $0x68] sm:$0xff]  ;;  %v2508_v13 = vld [vmem:[%s4706_s0 + $0x70] sm:$0xff] }
   0x7   :  { %v2506_v9 = vld [vmem:[%s4706_s0 + $0x60] sm:$0xff]  ;;  %v2497_v14 = vld [vmem:[%s4706_s0 + $0x18] sm:$0xff]  ;;  %v2524_v17 = vld [vmem:[%s4708_s2 + $0x30] sm:$0xff] }
   0x8   :  { %v2509_v15 = vld [vmem:[%s4706_s0 + $0x78] sm:$0xff]  ;;  %v2498_v18 = vld [vmem:[%s4706_s0 + $0x20] sm:$0xff]  ;;  %v2523_v19 = vld [vmem:[%s4708_s2 + $0x28] sm:$0xff] }
   0x9   :  { %v2525_v16 = vld [vmem:[%s4708_s2 + $0x38] sm:$0xff]  ;;  %v2522_v20 = vld [vmem:[%s4708_s2 + $0x20] sm:$0xff]  ;;  %v2499_v21 = vld [vmem:[%s4706_s0 + $0x28] sm:$0xff] }
   0xa   :  { %220 = vmatpush.bf16.msra.mxu0 %v2515_v2  ;;  %2536 = vmatpush.bf16.msra.mxu3 %v2515_v2  ;;  %v2521_v22 = vld [vmem:[%s4708_s2 + $0x18] sm:$0xff]  ;;  %v2500_v23 = vld [vmem:[%s4706_s0 + $0x30] sm:$0xff]  ;;  %v2519_v25 = vld [vmem:[%s4708_s2 + $0x8] sm:$0xff] }
   0xb   :  { %421 = vmatpush.bf16.msra.mxu1 %v2525_v16  ;;  %v2520_v24 = vld [vmem:[%s4708_s2 + $0x10] sm:$0xff]  ;;  %v2518_v26 = vld [vmem:[%s4708_s2] sm:$0xff]  ;;  %v2501_v27 = vld [vmem:[%s4706_s0 + $0x38] sm:$0xff] }
   0xc   :  { %v2502_v28 = vld [vmem:[%s4706_s0 + $0x40] sm:$0xff]  ;;  %v2503_v41 = vld [vmem:[%s4706_s0 + $0x48] sm:$0xff]  ;;  %v2504_v57 = vld [vmem:[%s4706_s0 + $0x50] sm:$0xff] }
   0xd   :  { %v2915_v30 = vld [vmem:[%s4710_s4] ss:$0 sm:$0xff] }
   0xe   :  { %221 = vmatpush.bf16.msra.mxu0 %v2514_v3  ;;  %2537 = vmatpush.bf16.msra.mxu3 %v2514_v3 }
   0xf   :  { %422 = vmatpush.bf16.msra.mxu1 %v2524_v17 }
  0x12   :  { %222 = vmatpush.bf16.msra.mxu0 %v2513_v4  ;;  %2538 = vmatpush.bf16.msra.mxu3 %v2513_v4 }
  0x13   :  { %423 = vmatpush.bf16.msra.mxu1 %v2523_v19 }
  0x16   :  { %223 = vmatpush.bf16.msra.mxu0 %v2512_v5  ;;  %2539 = vmatpush.bf16.msra.mxu3 %v2512_v5 }
  0x17   :  { %424 = vmatpush.bf16.msra.mxu1 %v2522_v20 }
  0x1a   :  { %224 = vmatpush.bf16.msra.mxu0 %v2511_v6  ;;  %2540 = vmatpush.bf16.msra.mxu3 %v2511_v6 }
  0x1b   :  { %425 = vmatpush.bf16.msra.mxu1 %v2521_v22 }
  0x1e   :  { %225 = vmatpush.bf16.msra.mxu0 %v2510_v7  ;;  %2541 = vmatpush.bf16.msra.mxu3 %v2510_v7 }
  0x1f   :  { %426 = vmatpush.bf16.msra.mxu1 %v2520_v24 }
  0x21   :  { %226 = vmatmul.bf16.vlgmr.msra.gmra.mxu0 %v2494_v8  ;;  %286 = vmatmul.bf16.vlgmr.msra.gmra.mxu3 %v2506_v9  ;;  %v2505_v8 = vld [vmem:[%s4706_s0 + $0x58] sm:$0xff] }
  0x22   :  { %2542 = vmatpush.bf16.msrb.mxu3 %v2525_v16 }
  0x23   :  { %427 = vmatpush.bf16.msra.mxu1 %v2519_v25 }
  0x26   :  { %2543 = vmatpush.bf16.msrb.mxu3 %v2524_v17 }
  0x27   :  { %428 = vmatpush.bf16.msra.mxu1 %v2518_v26 }
  0x2a   :  { %2544 = vmatpush.bf16.msrb.mxu3 %v2523_v19 }
  0x2e   :  { %2545 = vmatpush.bf16.msrb.mxu3 %v2522_v20 }
  0x31   :  { %231 = vmatmul.bf16.gmra.mxu0 %v2495_v10  ;;  %291 = vmatmul.bf16.gmra.mxu3 %v2507_v11 }
  0x32   :  { %2546 = vmatpush.bf16.msrb.mxu3 %v2521_v22 }
  0x36   :  { %2547 = vmatpush.bf16.msrb.mxu3 %v2520_v24 }
  0x3a   :  { %2548 = vmatpush.bf16.msrb.mxu3 %v2519_v25 }
  0x3e   :  { %2549 = vmatpush.bf16.msrb.mxu3 %v2518_v26 }
  0x41   :  { %236 = vmatmul.bf16.gmra.mxu0 %v2496_v12  ;;  %296 = vmatmul.bf16.gmra.mxu3 %v2508_v13 }
  0x51   :  { %241 = vmatmul.bf16.gmra.mxu0 %v2497_v14  ;;  %301 = vmatmul.bf16.gmra.mxu3 %v2509_v15 }
  0x61   :  { %246 = vmatmul.bf16.gmra.mxu0 %v2498_v18 }
  0x71   :  { %251 = vmatmul.bf16.gmra.mxu0 %v2499_v21 }
  0x81   :  { %256 = vmatmul.bf16.gmra.mxu0 %v2500_v23 }
  0x91   :  { %261 = vmatmul.bf16.gmra.mxu0 %v2501_v27 }
  0x9e   :  { %v227_v29 = vpop.f32.mrf.mxu0 }
  0x9f   :  { %v228_v32 = vadd.f32 %v2915_v30, %v227_v29 }
  0xa1   :  { %266 = vmatmul.bf16.gmra.mxu0 %v2502_v28  ;;  %v307_v35 = vmax.f32 %v228_v32, 0.0  ;;  %v2533_v32 = vld [vmem:[%s4709_s3 + $0x38] sm:$0xff] }
  0xa2   :  { %2550 = vmatpush.bf16.msra.mxu3 %v2533_v32  ;;  %624 = vmatpush.bf16.msra.mxu2 %v2533_v32  ;;  %v1584_v32 = vld [vmem:[%s4711_s5 + $0x38] sm:$0xff] }
  0xa4   :  { %v287_v31 = vpop.f32.mrf.mxu3 }
  0xa5   :  { %v288_v37 = vadd.f32 %v2915_v30, %v287_v31 }
  0xa6   :  { %v229_v33 = vpop.f32.mrf.mxu0 }
  0xa7   :  { %v230_v34 = vadd.f32 %v2915_v30, %v229_v33  ;;  %v331_v43 = vmax.f32 %v288_v37, 0.0 }
  0xa9   :  { %v308_v36 = vmax.f32 %v230_v34, 0.0 }
  0xab   :  { %v339_v38 = vpack.c.bf16 %v308_v36, %v307_v35  ;;  %v2532_v35 = vld [vmem:[%s4709_s3 + $0x30] sm:$0xff] }
  0xac   :  { %v289_v39 = vpop.f32.mrf.mxu3  ;;  %2551 = vmatpush.bf16.msra.mxu3 %v2532_v35  ;;  %625 = vmatpush.bf16.msra.mxu2 %v2532_v35 }
  0xad   :  { %v290_v40 = vadd.f32 %v2915_v30, %v289_v39  ;;  %429 = vmatmul.bf16.vlgmr.msra.gmra.mxu1 %v339_v38 }
  0xae   :  { %v232_v42 = vpop.f32.mrf.mxu0 }
  0xaf   :  { %v332_v44 = vmax.f32 %v290_v40, 0.0  ;;  %v233_v47 = vadd.f32 %v2915_v30, %v232_v42 }
  0xb1   :  { %v351_v45 = vpack.c.bf16 %v332_v44, %v331_v43  ;;  %271 = vmatmul.bf16.gmra.mxu0 %v2503_v41  ;;  %v309_v50 = vmax.f32 %v233_v47, 0.0  ;;  %v2531_v41 = vld [vmem:[%s4709_s3 + $0x28] sm:$0xff]  ;;  %v2530_v44 = vld [vmem:[%s4709_s3 + $0x20] sm:$0xff] }
  0xb2   :  { %2552 = vmatpush.bf16.msra.mxu3 %v2531_v41  ;;  %626 = vmatpush.bf16.msra.mxu2 %v2531_v41 }
  0xb3   :  { %489 = vmatmul.bf16.vlgmr.msrb.gmra.mxu3 %v351_v45 }
  0xb4   :  { %v292_v46 = vpop.f32.mrf.mxu3 }
  0xb5   :  { %v293_v51 = vadd.f32 %v2915_v30, %v292_v46 }
  0xb6   :  { %v234_v48 = vpop.f32.mrf.mxu0  ;;  %2553 = vmatpush.bf16.msra.mxu3 %v2530_v44  ;;  %627 = vmatpush.bf16.msra.mxu2 %v2530_v44 }
  0xb7   :  { %v235_v49 = vadd.f32 %v2915_v30, %v234_v48  ;;  %v333_v55 = vmax.f32 %v293_v51, 0.0 }
  0xb9   :  { %v310_v52 = vmax.f32 %v235_v49, 0.0  ;;  %v2529_v49 = vld [vmem:[%s4709_s3 + $0x18] sm:$0xff] }
  0xba   :  { %2554 = vmatpush.bf16.msra.mxu3 %v2529_v49  ;;  %628 = vmatpush.bf16.msra.mxu2 %v2529_v49  ;;  %v1589_v49 = vld [vmem:[%s4711_s5 + $0x60] sm:$0xff] }
  0xbb   :  { %v340_v53 = vpack.c.bf16 %v310_v52, %v309_v50  ;;  %v2528_v52 = vld [vmem:[%s4709_s3 + $0x10] sm:$0xff] }
  0xbc   :  { %v294_v54 = vpop.f32.mrf.mxu3 }
  0xbd   :  { %v295_v56 = vadd.f32 %v2915_v30, %v294_v54  ;;  %434 = vmatmul.bf16.gmra.mxu1 %v340_v53  ;;  %v2527_v54 = vld [vmem:[%s4709_s3 + $0x8] sm:$0xff] }
  0xbe   :  { %v237_v58 = vpop.f32.mrf.mxu0  ;;  %629 = vmatpush.bf16.msra.mxu2 %v2528_v52  ;;  %2555 = vmatpush.bf16.msra.mxu3 %v2528_v52 }
  0xbf   :  { %v334_v59 = vmax.f32 %v295_v56, 0.0  ;;  %v238_v61 = vadd.f32 %v2915_v30, %v237_v58  ;;  %v2526_v56 = vld [vmem:[%s4709_s3] sm:$0xff]  ;;  %s2785_s3 = smov 16  }
  0xc1   :  { %276 = vmatmul.bf16.gmra.mxu0 %v2504_v57  ;;  %v352_v60 = vpack.c.bf16 %v334_v59, %v333_v55  ;;  %v311_v0 = vmax.f32 %v238_v61, 0.0 }
  0xc2   :  { %630 = vmatpush.bf16.msra.mxu2 %v2527_v54  ;;  %2556 = vmatpush.bf16.msra.mxu3 %v2527_v54 }
  0xc3   :  { %494 = vmatmul.bf16.gmra.mxu3 %v352_v60 }
  0xc4   :  { %v297_v62 = vpop.f32.mrf.mxu3 }
  0xc5   :  { %v298_v2 = vadd.f32 %v2915_v30, %v297_v62 }
  0xc6   :  { %v239_v63 = vpop.f32.mrf.mxu0  ;;  %631 = vmatpush.bf16.msra.mxu2 %v2526_v56  ;;  %2557 = vmatpush.bf16.msra.mxu3 %v2526_v56 }
  0xc7   :  { %v240_v1 = vadd.f32 %v2915_v30, %v239_v63  ;;  %v335_v6 = vmax.f32 %v298_v2, 0.0 }
  0xc9   :  { %v312_v3 = vmax.f32 %v240_v1, 0.0 }
  0xcb   :  { %v341_v4 = vpack.c.bf16 %v312_v3, %v311_v0  ;;  %v1577_v3 = vld [vmem:[%s4711_s5] sm:$0xff] }
  0xcc   :  { %v299_v5 = vpop.f32.mrf.mxu3  ;;  %1641 = vrot.lane.b32.xlu0 %v1577_v3, %s2785_s3 }
  0xcd   :  { %v300_v7 = vadd.f32 %v2915_v30, %v299_v5  ;;  %439 = vmatmul.bf16.gmra.mxu1 %v341_v4 }
  0xce   :  { %v242_v9 = vpop.f32.mrf.mxu0 }
  0xcf   :  { %v336_v10 = vmax.f32 %v300_v7, 0.0  ;;  %v243_v12 = vadd.f32 %v2915_v30, %v242_v9  ;;  %v2983_v7 = vld [vmem:[%s4710_s4 + $0x1] ss:$0 sm:$0xff]  ;;  %v1579_v9 = vld [vmem:[%s4711_s5 + $0x10] sm:$0xff] }
  0xd0   :  { %1645 = vrot.lane.b32.xlu1 %v1579_v9, %s2785_s3 }
  0xd1   :  { %281 = vmatmul.bf16.gmra.mxu0 %v2505_v8  ;;  %v353_v11 = vpack.c.bf16 %v336_v10, %v335_v6  ;;  %v313_v15 = vmax.f32 %v243_v12, 0.0  ;;  %v1578_v10 = vld [vmem:[%s4711_s5 + $0x8] sm:$0xff] }
  0xd3   :  { %499 = vmatmul.bf16.gmra.mxu3 %v353_v11 }
  0xd4   :  { %v302_v13 = vpop.f32.mrf.mxu3  ;;  %1643 = vrot.lane.b32.xlu0 %v1578_v10, %s2785_s3  ;;  %v1595_v10 = vld [vmem:[%s4711_s5 + $0x90] sm:$0xff] }
  0xd5   :  { %v303_v17 = vadd.f32 %v2915_v30, %v302_v13 }
  0xd6   :  { %v244_v14 = vpop.f32.mrf.mxu0 }
  0xd7   :  { %v245_v16 = vadd.f32 %v2915_v30, %v244_v14  ;;  %v337_v21 = vmax.f32 %v303_v17, 0.0 }
  0xd9   :  { %v314_v18 = vmax.f32 %v245_v16, 0.0 }
  0xdb   :  { %v342_v19 = vpack.c.bf16 %v314_v18, %v313_v15 }
  0xdc   :  { %v304_v20 = vpop.f32.mrf.mxu3 }
  0xdd   :  { %v305_v22 = vadd.f32 %v2915_v30, %v304_v20  ;;  %444 = vmatmul.bf16.gmra.mxu1 %v342_v19 }
  0xde   :  { %v247_v23 = vpop.f32.mrf.mxu0 }
  0xdf   :  { %v338_v24 = vmax.f32 %v305_v22, 0.0  ;;  %v248_v26 = vadd.f32 %v2915_v30, %v247_v23  ;;  %v1580_v22 = vld [vmem:[%s4711_s5 + $0x18] sm:$0xff]  ;;  %v1583_v23 = vld [vmem:[%s4711_s5 + $0x30] sm:$0xff] }
  0xe0   :  { %1647 = vrot.lane.b32.xlu1 %v1580_v22, %s2785_s3  ;;  %1653 = vrot.lane.b32.xlu0 %v1583_v23, %s2785_s3 }
  0xe1   :  { %v354_v25 = vpack.c.bf16 %v338_v24, %v337_v21  ;;  %v315_v28 = vmax.f32 %v248_v26, 0.0 }
  0xe3   :  { %504 = vmatmul.bf16.gmra.mxu3 %v354_v25 }
  0xe6   :  { %v249_v27 = vpop.f32.mrf.mxu0 }
  0xe7   :  { %v250_v29 = vadd.f32 %v2915_v30, %v249_v27 }
  0xe8   :  { %1655 = vrot.lane.b32.xlu1 %v1584_v32, %s2785_s3  ;;  %v1599_v32 = vld [vmem:[%s4711_s5 + $0xb0] sm:$0xff] }
  0xe9   :  { %v316_v31 = vmax.f32 %v250_v29, 0.0 }
  0xeb   :  { %v343_v33 = vpack.c.bf16 %v316_v31, %v315_v28 }
  0xed   :  { %449 = vmatmul.bf16.gmra.mxu1 %v343_v33  ;;  %v1586_v33 = vld [vmem:[%s4711_s5 + $0x48] sm:$0xff] }
  0xee   :  { %v252_v34 = vpop.f32.mrf.mxu0  ;;  %1659 = vrot.lane.b32.xlu0 %v1586_v33, %s2785_s3 }
  0xef   :  { %v253_v36 = vadd.f32 %v2915_v30, %v252_v34 }
  0xf1   :  { %v317_v38 = vmax.f32 %v253_v36, 0.0 }
  0xf6   :  { %v254_v37 = vpop.f32.mrf.mxu0  ;;  %1665 = vrot.lane.b32.xlu0 %v1589_v49, %s2785_s3 }
  0xf7   :  { %v255_v39 = vadd.f32 %v2915_v30, %v254_v37 }
  0xf9   :  { %v318_v40 = vmax.f32 %v255_v39, 0.0 }
  0xfb   :  { %v344_v42 = vpack.c.bf16 %v318_v40, %v317_v38 }
  0xfd   :  { %454 = vmatmul.bf16.gmra.mxu1 %v344_v42 }
  0xfe   :  { %v257_v43 = vpop.f32.mrf.mxu0 }
  0xff   :  { %v258_v45 = vadd.f32 %v2915_v30, %v257_v43 }
 0x101   :  { %v319_v47 = vmax.f32 %v258_v45, 0.0 }
 0x106   :  { %v259_v46 = vpop.f32.mrf.mxu0 }
 0x107   :  { %v260_v48 = vadd.f32 %v2915_v30, %v259_v46 }
 0x109   :  { %v320_v50 = vmax.f32 %v260_v48, 0.0  ;;  %v1587_v48 = vld [vmem:[%s4711_s5 + $0x50] sm:$0xff] }
 0x10a   :  { %1661 = vrot.lane.b32.xlu1 %v1587_v48, %s2785_s3 }
 0x10b   :  { %v345_v51 = vpack.c.bf16 %v320_v50, %v319_v47 }
 0x10d   :  { %459 = vmatmul.bf16.gmra.mxu1 %v345_v51 }
 0x10e   :  { %v262_v53 = vpop.f32.mrf.mxu0 }
 0x10f   :  { %v263_v55 = vadd.f32 %v2915_v30, %v262_v53 }
 0x111   :  { %v321_v58 = vmax.f32 %v263_v55, 0.0 }
 0x116   :  { %v264_v57 = vpop.f32.mrf.mxu0 }
 0x117   :  { %v265_v59 = vadd.f32 %v2915_v30, %v264_v57  ;;  %v1581_v57 = vld [vmem:[%s4711_s5 + $0x20] sm:$0xff] }
 0x118   :  { %1649 = vrot.lane.b32.xlu2 %v1581_v57, %s2785_s3 }
 0x119   :  { %v322_v60 = vmax.f32 %v265_v59, 0.0  ;;  %v1592_v59 = vld [vmem:[%s4711_s5 + $0x78] sm:$0xff] }
 0x11a   :  { %1671 = vrot.lane.b32.xlu0 %v1592_v59, %s2785_s3 }
 0x11b   :  { %v346_v61 = vpack.c.bf16 %v322_v60, %v321_v58  ;;  %v1590_v58 = vld [vmem:[%s4711_s5 + $0x68] sm:$0xff] }
 0x11c   :  { %1667 = vrot.lane.b32.xlu1 %v1590_v58, %s2785_s3 }
 0x11d   :  { %464 = vmatmul.bf16.gmra.mxu1 %v346_v61 }
 0x11e   :  { %v267_v62 = vpop.f32.mrf.mxu0 }
 0x11f   :  { %v268_v63 = vadd.f32 %v2915_v30, %v267_v62 }
 0x121   :  { %v323_v1 = vmax.f32 %v268_v63, 0.0 }
 0x122   :  { %1677 = vrot.lane.b32.xlu0 %v1595_v10, %s2785_s3 }
 0x126   :  { %v269_v0 = vpop.f32.mrf.mxu0 }
 0x127   :  { %v270_v2 = vadd.f32 %v2915_v30, %v269_v0 }
 0x129   :  { %v324_v4 = vmax.f32 %v270_v2, 0.0 }
 0x12a   :  { %v430_v5 = vpop.f32.mrf.mxu1 }
 0x12b   :  { %v347_v6 = vpack.c.bf16 %v324_v4, %v323_v1  ;;  %v431_v11 = vadd.f32 %v2983_v7, %v430_v5  ;;  %v1582_v5 = vld [vmem:[%s4711_s5 + $0x28] sm:$0xff] }
 0x12c   :  { %1651 = vrot.lane.b32.xlu2 %v1582_v5, %s2785_s3 }
 0x12d   :  { %469 = vmatmul.bf16.gmra.mxu1 %v347_v6  ;;  %v510_v15 = vmax.f32 %v431_v11, 0.0  ;;  %v1593_v6 = vld [vmem:[%s4711_s5 + $0x80] sm:$0xff] }
 0x12e   :  { %v272_v8 = vpop.f32.mrf.mxu0  ;;  %1673 = vrot.lane.b32.xlu1 %v1593_v6, %s2785_s3  ;;  %v1608_v6 = vld [vmem:[%s4711_s5 + $0xf8] sm:$0xff] }
 0x12f   :  { %v273_v13 = vadd.f32 %v2915_v30, %v272_v8 }
 0x131   :  { %v325_v19 = vmax.f32 %v273_v13, 0.0 }
 0x132   :  { %v432_v12 = vpop.f32.mrf.mxu1 }
 0x133   :  { %v433_v14 = vadd.f32 %v2983_v7, %v432_v12 }
 0x135   :  { %v511_v16 = vmax.f32 %v433_v14, 0.0 }
 0x136   :  { %v274_v17 = vpop.f32.mrf.mxu0  ;;  %v490_v18 = vpop.f32.mrf.mxu3 }
 0x137   :  { %v275_v20 = vadd.f32 %v2915_v30, %v274_v17  ;;  %v542_v21 = vpack.c.bf16 %v511_v16, %v510_v15  ;;  %v491_v27 = vadd.f32 %v2983_v7, %v490_v18  ;;  %v1585_v18 = vld [vmem:[%s4711_s5 + $0x40] sm:$0xff] }
 0x138   :  { %1657 = vrot.lane.b32.xlu2 %v1585_v18, %s2785_s3 }
 0x139   :  { %v326_v24 = vmax.f32 %v275_v20, 0.0  ;;  %632 = vmatmul.bf16.vlgmr.msra.gmra.mxu2 %v542_v21  ;;  %v534_v34 = vmax.f32 %v491_v27, 0.0  ;;  %v1598_v20 = vld [vmem:[%s4711_s5 + $0xa8] sm:$0xff] }
 0x13a   :  { %v435_v25 = vpop.f32.mrf.mxu1  ;;  %1683 = vrot.lane.b32.xlu0 %v1598_v20, %s2785_s3 }
 0x13b   :  { %v348_v26 = vpack.c.bf16 %v326_v24, %v325_v19  ;;  %v436_v35 = vadd.f32 %v2983_v7, %v435_v25 }
 0x13d   :  { %474 = vmatmul.bf16.gmra.mxu1 %v348_v26  ;;  %v512_v41 = vmax.f32 %v436_v35, 0.0 }
 0x13e   :  { %v277_v28 = vpop.f32.mrf.mxu0  ;;  %v492_v29 = vpop.f32.mrf.mxu3 }
 0x13f   :  { %v493_v31 = vadd.f32 %v2983_v7, %v492_v29  ;;  %v278_v38 = vadd.f32 %v2915_v30, %v277_v28 }
 0x141   :  { %v535_v36 = vmax.f32 %v493_v31, 0.0  ;;  %v327_v45 = vmax.f32 %v278_v38, 0.0  ;;  %v1588_v31 = vld [vmem:[%s4711_s5 + $0x58] sm:$0xff]  ;;  %v1591_v38 = vld [vmem:[%s4711_s5 + $0x70] sm:$0xff] }
 0x142   :  { %v437_v37 = vpop.f32.mrf.mxu1  ;;  %1663 = vrot.lane.b32.xlu2 %v1588_v31, %s2785_s3 }
 0x143   :  { %v554_v39 = vpack.c.bf16 %v535_v36, %v534_v34  ;;  %v438_v40 = vadd.f32 %v2983_v7, %v437_v37  ;;  %v1601_v34 = vld [vmem:[%s4711_s5 + $0xc0] sm:$0xff] }
 0x144   :  { %1689 = vrot.lane.b32.xlu0 %v1601_v34, %s2785_s3 }
 0x145   :  { %v513_v42 = vmax.f32 %v438_v40, 0.0  ;;  %692 = vmatmul.bf16.vlgmr.msra.gmra.mxu3 %v554_v39  ;;  %v1602_v39 = vld [vmem:[%s4711_s5 + $0xc8] sm:$0xff] }
 0x146   :  { %v279_v43 = vpop.f32.mrf.mxu0  ;;  %v495_v44 = vpop.f32.mrf.mxu3 }
 0x147   :  { %v280_v46 = vadd.f32 %v2915_v30, %v279_v43  ;;  %v543_v47 = vpack.c.bf16 %v513_v42, %v512_v41  ;;  %v496_v53 = vadd.f32 %v2983_v7, %v495_v44 }
 0x149   :  { %v328_v50 = vmax.f32 %v280_v46, 0.0  ;;  %637 = vmatmul.bf16.gmra.mxu2 %v543_v47  ;;  %v536_v60 = vmax.f32 %v496_v53, 0.0  ;;  %v1597_v53 = vld [vmem:[%s4711_s5 + $0xa0] sm:$0xff] }
 0x14a   :  { %v440_v51 = vpop.f32.mrf.mxu1  ;;  %1669 = vrot.lane.b32.xlu2 %v1591_v38, %s2785_s3 }
 0x14b   :  { %v349_v52 = vpack.c.bf16 %v328_v50, %v327_v45  ;;  %v441_v61 = vadd.f32 %v2983_v7, %v440_v51  ;;  %v1594_v50 = vld [vmem:[%s4711_s5 + $0x88] sm:$0xff] }
 0x14d   :  { %479 = vmatmul.bf16.gmra.mxu1 %v349_v52  ;;  %v514_v3 = vmax.f32 %v441_v61, 0.0  ;;  %v1605_v61 = vld [vmem:[%s4711_s5 + $0xe0] sm:$0xff] }
 0x14e   :  { %v282_v54 = vpop.f32.mrf.mxu0  ;;  %v497_v55 = vpop.f32.mrf.mxu3 }
 0x14f   :  { %v498_v56 = vadd.f32 %v2983_v7, %v497_v55  ;;  %v283_v0 = vadd.f32 %v2915_v30, %v282_v54  ;;  %v1604_v54 = vld [vmem:[%s4711_s5 + $0xd8] sm:$0xff] }
 0x150   :  { %1695 = vrot.lane.b32.xlu0 %v1604_v54, %s2785_s3 }
 0x151   :  { %v537_v62 = vmax.f32 %v498_v56, 0.0  ;;  %v329_v11 = vmax.f32 %v283_v0, 0.0  ;;  %v1603_v0 = vld [vmem:[%s4711_s5 + $0xd0] sm:$0xff] }
 0x152   :  { %v442_v63 = vpop.f32.mrf.mxu1  ;;  %1675 = vrot.lane.b32.xlu2 %v1594_v50, %s2785_s3 }
 0x153   :  { %v443_v1 = vadd.f32 %v2983_v7, %v442_v63  ;;  %v555_v2 = vpack.c.bf16 %v537_v62, %v536_v60  ;;  %v1600_v60 = vld [vmem:[%s4711_s5 + $0xb8] sm:$0xff] }
 0x155   :  { %v515_v4 = vmax.f32 %v443_v1, 0.0  ;;  %697 = vmatmul.bf16.gmra.mxu3 %v555_v2 }
 0x156   :  { %v284_v8 = vpop.f32.mrf.mxu0  ;;  %v500_v9 = vpop.f32.mrf.mxu3 }
 0x157   :  { %v285_v12 = vadd.f32 %v2915_v30, %v284_v8  ;;  %v544_v13 = vpack.c.bf16 %v515_v4, %v514_v3  ;;  %v501_v16 = vadd.f32 %v2983_v7, %v500_v9  ;;  %v1596_v30 = vld [vmem:[%s4711_s5 + $0x98] sm:$0xff]  ;;  %v1607_v8 = vld [vmem:[%s4711_s5 + $0xf0] sm:$0xff] }
 0x158   :  { %1679 = vrot.lane.b32.xlu1 %v1596_v30, %s2785_s3  ;;  %1701 = vrot.lane.b32.xlu0 %v1607_v8, %s2785_s3 }
 0x159   :  { %v330_v14 = vmax.f32 %v285_v12, 0.0  ;;  %642 = vmatmul.bf16.gmra.mxu2 %v544_v13  ;;  %v538_v21 = vmax.f32 %v501_v16, 0.0 }
 0x15a   :  { %v445_v15 = vpop.f32.mrf.mxu1  ;;  %1681 = vrot.lane.b32.xlu2 %v1597_v53, %s2785_s3 }
 0x15b   :  { %v350_v17 = vpack.c.bf16 %v330_v14, %v329_v11  ;;  %v446_v22 = vadd.f32 %v2983_v7, %v445_v15  ;;  %v1606_v11 = vld [vmem:[%s4711_s5 + $0xe8] sm:$0xff] }
 0x15d   :  { %484 = vmatmul.bf16.gmra.mxu1 %v350_v17  ;;  %v516_v26 = vmax.f32 %v446_v22, 0.0 }
 0x15e   :  { %v502_v19 = vpop.f32.mrf.mxu3 }
 0x15f   :  { %v503_v23 = vadd.f32 %v2983_v7, %v502_v19 }
 0x160   :  { %1685 = vrot.lane.b32.xlu1 %v1599_v32, %s2785_s3 }
 0x161   :  { %v539_v24 = vmax.f32 %v503_v23, 0.0 }
 0x162   :  { %v447_v25 = vpop.f32.mrf.mxu1  ;;  %1687 = vrot.lane.b32.xlu2 %v1600_v60, %s2785_s3 }
 0x163   :  { %v448_v27 = vadd.f32 %v2983_v7, %v447_v25  ;;  %v556_v28 = vpack.c.bf16 %v539_v24, %v538_v21  ;;  %v3144_v24 = vld [vmem:[%s4710_s4 + $0x2] ss:$0 sm:$0xff] }
 0x165   :  { %v517_v29 = vmax.f32 %v448_v27, 0.0  ;;  %702 = vmatmul.bf16.gmra.mxu3 %v556_v28 }
 0x166   :  { %v505_v33 = vpop.f32.mrf.mxu3 }
 0x167   :  { %v545_v35 = vpack.c.bf16 %v517_v29, %v516_v26  ;;  %v506_v37 = vadd.f32 %v2983_v7, %v505_v33 }
 0x168   :  { %1691 = vrot.lane.b32.xlu1 %v1602_v39, %s2785_s3 }
 0x169   :  { %647 = vmatmul.bf16.gmra.mxu2 %v545_v35  ;;  %v540_v41 = vmax.f32 %v506_v37, 0.0 }
 0x16a   :  { %v450_v36 = vpop.f32.mrf.mxu1  ;;  %1693 = vrot.lane.b32.xlu2 %v1603_v0, %s2785_s3 }
 0x16b   :  { %v451_v42 = vadd.f32 %v2983_v7, %v450_v36 }
 0x16d   :  { %v518_v46 = vmax.f32 %v451_v42, 0.0 }
 0x16e   :  { %v507_v40 = vpop.f32.mrf.mxu3 }
 0x16f   :  { %v508_v43 = vadd.f32 %v2983_v7, %v507_v40 }
 0x170   :  { %1697 = vrot.lane.b32.xlu1 %v1605_v61, %s2785_s3 }
 0x171   :  { %v541_v44 = vmax.f32 %v508_v43, 0.0 }
 0x172   :  { %v452_v45 = vpop.f32.mrf.mxu1  ;;  %1699 = vrot.lane.b32.xlu2 %v1606_v11, %s2785_s3 }
 0x173   :  { %v453_v47 = vadd.f32 %v2983_v7, %v452_v45  ;;  %v557_v48 = vpack.c.bf16 %v541_v44, %v540_v41 }
 0x175   :  { %v519_v49 = vmax.f32 %v453_v47, 0.0  ;;  %707 = vmatmul.bf16.gmra.mxu3 %v557_v48 }
 0x177   :  { %v546_v51 = vpack.c.bf16 %v519_v49, %v518_v46 }
 0x178   :  { %1703 = vrot.lane.b32.xlu1 %v1608_v6, %s2785_s3 }
 0x179   :  { %652 = vmatmul.bf16.gmra.mxu2 %v546_v51 }
 0x17a   :  { %v455_v52 = vpop.f32.mrf.mxu1 }
 0x17b   :  { %v456_v55 = vadd.f32 %v2983_v7, %v455_v52 }
 0x17d   :  { %v520_v57 = vmax.f32 %v456_v55, 0.0 }
 0x182   :  { %v457_v56 = vpop.f32.mrf.mxu1 }
 0x183   :  { %v458_v58 = vadd.f32 %v2983_v7, %v457_v56 }
 0x185   :  { %v521_v59 = vmax.f32 %v458_v58, 0.0 }
 0x187   :  { %v547_v62 = vpack.c.bf16 %v521_v59, %v520_v57 }
 0x189   :  { %657 = vmatmul.bf16.gmra.mxu2 %v547_v62 }
 0x18a   :  { %v460_v63 = vpop.f32.mrf.mxu1 }
 0x18b   :  { %v461_v1 = vadd.f32 %v2983_v7, %v460_v63 }
 0x18d   :  { %v522_v3 = vmax.f32 %v461_v1, 0.0 }
 0x192   :  { %v462_v2 = vpop.f32.mrf.mxu1 }
 0x193   :  { %v463_v4 = vadd.f32 %v2983_v7, %v462_v2 }
 0x195   :  { %v523_v5 = vmax.f32 %v463_v4, 0.0 }
 0x197   :  { %v548_v9 = vpack.c.bf16 %v523_v5, %v522_v3 }
 0x199   :  { %662 = vmatmul.bf16.gmra.mxu2 %v548_v9  ;;  %v3180_v9 = vpop.permute.xlu0 %1641 }
 0x19a   :  { %v465_v10 = vpop.f32.mrf.mxu1 }
 0x19b   :  { %v466_v12 = vadd.f32 %v2983_v7, %v465_v10 }
 0x19d   :  { %v524_v14 = vmax.f32 %v466_v12, 0.0 }
 0x1a2   :  { %v467_v13 = vpop.f32.mrf.mxu1 }
 0x1a3   :  { %v468_v15 = vadd.f32 %v2983_v7, %v467_v13 }
 0x1a5   :  { %v525_v16 = vmax.f32 %v468_v15, 0.0 }
 0x1a7   :  { %v549_v17 = vpack.c.bf16 %v525_v16, %v524_v14 }
 0x1a9   :  { %667 = vmatmul.bf16.gmra.mxu2 %v549_v17 }
 0x1aa   :  { %v470_v18 = vpop.f32.mrf.mxu1 }
 0x1ab   :  { %v471_v30 = vadd.f32 %v2983_v7, %v470_v18 }
 0x1ad   :  { %v526_v20 = vmax.f32 %v471_v30, 0.0 }
 0x1b2   :  { %v472_v19 = vpop.f32.mrf.mxu1 }
 0x1b3   :  { %v473_v21 = vadd.f32 %v2983_v7, %v472_v19 }
 0x1b5   :  { %v527_v22 = vmax.f32 %v473_v21, 0.0 }
 0x1b7   :  { %v550_v23 = vpack.c.bf16 %v527_v22, %v526_v20 }
 0x1b9   :  { %672 = vmatmul.bf16.gmra.mxu2 %v550_v23 }
 0x1ba   :  { %v475_v25 = vpop.f32.mrf.mxu1 }
 0x1bb   :  { %v476_v28 = vadd.f32 %v2983_v7, %v475_v25 }
 0x1bc   :  { %v633_v26 = vpop.f32.mrf.mxu2 }
 0x1bd   :  { %v3147_v27 = vadd.f32 %v3144_v24, %v633_v26  ;;  %v528_v33 = vmax.f32 %v476_v28, 0.0 }
 0x1bf   :  { %v745_v29 = vand.u32 2147483647, %v3147_v27  ;;  %1961 = vrot.lane.b32.xlu1 %v3147_v27, %s2785_s3  ;;  %v713_v13 = vmax.f32 %v3147_v27, 0.0 }
 0x1c1   :  { %v777_v31 = vsub.f32 0.0, %v745_v29 }
 0x1c2   :  { %v477_v32 = vpop.f32.mrf.mxu1 }
 0x1c3   :  { %v809_v34 = vmul.f32 1.442695, %v777_v31  ;;  %v478_v35 = vadd.f32 %v2983_v7, %v477_v32 }
 0x1c4   :  { %v635_v36 = vpop.f32.mrf.mxu2 }
 0x1c5   :  { %2566 = vpow2.f32 %v809_v34  ;;  %v529_v37 = vmax.f32 %v478_v35, 0.0  ;;  %v3155_v38 = vadd.f32 %v3144_v24, %v635_v36 }
 0x1c7   :  { %4735 = vst [vmem:[#allocation5_spill] sm:$0xff] %v3155_v38  ;;  %v746_v39 = vand.u32 2147483647, %v3155_v38  ;;  %1963 = vrot.lane.b32.xlu2 %v3155_v38, %s2785_s3  ;;  %v551_v40 = vpack.c.bf16 %v529_v37, %v528_v33 }
 0x1c8   :  { %v693_v41 = vpop.f32.mrf.mxu3 }
 0x1c9   :  { %v778_v42 = vsub.f32 0.0, %v746_v39  ;;  %v3161_v43 = vadd.f32 %v3144_v24, %v693_v41  ;;  %677 = vmatmul.bf16.gmra.mxu2 %v551_v40  ;;  %v714_v39 = vmax.f32 %v3155_v38, 0.0  ;;  %v3194_v41 = vpop.permute.xlu0 %1643 }
 0x1ca   :  { %v480_v44 = vpop.f32.mrf.mxu1 }
 0x1cb   :  { %v2567_v45 = vpop.eup %2566  ;;  %v811_v46 = vmul.f32 1.442695, %v778_v42  ;;  %v769_v47 = vand.u32 2147483647, %v3161_v43  ;;  %2009 = vrot.lane.b32.xlu1 %v3161_v43, %s2785_s3  ;;  %v481_v54 = vadd.f32 %v2983_v7, %v480_v44 }
 0x1cc   :  { %v873_v48 = vadd.f32 1.0, %v2567_v45  ;;  %v876_v49 = vmul.f32 -0.5, %v2567_v45  ;;  %v638_v50 = vpop.f32.mrf.mxu2  ;;  %v879_v60 = vand.u32 2147483647, %v2567_v45 }
 0x1cd   :  { %2568 = vpow2.f32 %v811_v46  ;;  %v801_v51 = vsub.f32 0.0, %v769_v47  ;;  %v3167_v52 = vadd.f32 %v3144_v24, %v638_v50  ;;  %v530_v63 = vmax.f32 %v481_v54, 0.0 }
 0x1ce   :  { %2570 = vlog2.f32 %v873_v48  ;;  %v877_v56 = vadd.f32 1.0, %v876_v49  ;;  %vm880_vm0 = vcmp.lt.f32.partialorder %v879_v60, 0.0004427343  ;;  %v3202_v49 = vpop.permute.xlu2 %1649 }
 0x1cf   :  { %4736 = vst [vmem:[#allocation6_spill] sm:$0xff] %v3167_v52  ;;  %v857_v53 = vmul.f32 1.442695, %v801_v51  ;;  %v747_v55 = vand.u32 2147483647, %v3167_v52  ;;  %1965 = vrot.lane.b32.xlu0 %v3167_v52, %s2785_s3 }
 0x1d0   :  { %v695_v57 = vpop.f32.mrf.mxu3  ;;  %v878_v4 = vmul.f32 %v2567_v45, %v877_v56 }
 0x1d1   :  { %2572 = vpow2.f32 %v857_v53  ;;  %v779_v58 = vsub.f32 0.0, %v747_v55  ;;  %v3174_v59 = vadd.f32 %v3144_v24, %v695_v57 }
 0x1d2   :  { %v482_v61 = vpop.f32.mrf.mxu1 }
 0x1d3   :  { %4737 = vst [vmem:[#allocation7_spill] sm:$0xff] %v3174_v59  ;;  %v2569_v62 = vpop.eup %2568  ;;  %v813_v0 = vmul.f32 1.442695, %v779_v58  ;;  %v770_v1 = vand.u32 2147483647, %v3174_v59  ;;  %v483_v2 = vadd.f32 %v2983_v7, %v482_v61  ;;  %2011 = vrot.lane.b32.xlu2 %v3174_v59, %s2785_s3 }
 0x1d4   :  { %v2571_v3 = vpop.eup %2570  ;;  %v882_v5 = vadd.f32 1.0, %v2569_v62  ;;  %v885_v6 = vmul.f32 -0.5, %v2569_v62  ;;  %v640_v8 = vpop.f32.mrf.mxu2  ;;  %v888_v23 = vand.u32 2147483647, %v2569_v62 }
 0x1d5   :  { %v875_v10 = vmul.f32 0.6931472, %v2571_v3  ;;  %2574 = vpow2.f32 %v813_v0  ;;  %v802_v11 = vsub.f32 0.0, %v770_v1  ;;  %v531_v12 = vmax.f32 %v483_v2, 0.0 }
 0x1d6   :  { %2576 = vlog2.f32 %v882_v5  ;;  %v3184_v14 = vadd.f32 %v3144_v24, %v640_v8  ;;  %v886_v20 = vadd.f32 1.0, %v885_v6  ;;  %vm889_vm1 = vcmp.lt.f32.partialorder %v888_v23, 0.0004427343 }
 0x1d7   :  { %v2573_v15 = vpop.eup %2572  ;;  %v881_v16 = vsel %vm880_vm0, %v878_v4, %v875_v10  ;;  %v859_v17 = vmul.f32 1.442695, %v802_v11  ;;  %v552_v18 = vpack.c.bf16 %v531_v12, %v530_v63  ;;  %v715_v2 = vmax.f32 %v3167_v52, 0.0 }
 0x1d8   :  { %4738 = vst [vmem:[#allocation8_spill] sm:$0xff] %v3184_v14  ;;  %v3186_v30 = vadd.f32 %v881_v16, %v713_v13  ;;  %v1089_v19 = vadd.f32 1.0, %v2573_v15  ;;  %1967 = vrot.lane.b32.xlu1 %v3184_v14, %s2785_s3  ;;  %v748_v21 = vand.u32 2147483647, %v3184_v14  ;;  %v698_v22 = vpop.f32.mrf.mxu3  ;;  %v1092_v31 = vmul.f32 -0.5, %v2573_v15 }
 0x1d9   :  { %2578 = vpow2.f32 %v859_v17  ;;  %682 = vmatmul.bf16.gmra.mxu2 %v552_v18  ;;  %v887_v35 = vmul.f32 %v2569_v62, %v886_v20  ;;  %v3205_v51 = vadd.f32 %v3144_v24, %v698_v22  ;;  %v1095_v53 = vand.u32 2147483647, %v2573_v15 }
 0x1da   :  { %2580 = vlog2.f32 %v1089_v19  ;;  %v485_v25 = vpop.f32.mrf.mxu1  ;;  %2089 = vrot.lane.b32.xlu0 %v3186_v30, %s2785_s3  ;;  %v780_v28 = vsub.f32 0.0, %v748_v21  ;;  %v1093_v48 = vadd.f32 1.0, %v1092_v31  ;;  %vm1200_vm7 = vcmp.eq.f32.partialorder %v3186_v30, inf }
 0x1db   :  { %v2575_v26 = vpop.eup %2574  ;;  %v486_v44 = vadd.f32 %v2983_v7, %v485_v25  ;;  %4740 = vst [vmem:[#allocation10_spill] sm:$0xff] %v3205_v51  ;;  %vm3216_vm2 = vcmp.lt.f32.partialorder %v1095_v53, 0.0004427343  ;;  %v3230_v25 = vpop.permute.xlu0 %1653  ;;  %vm1202_vm8 = vcmp.eq.f32.partialorder %v3186_v30, 0.0 }
 0x1dc   :  { %v2577_v29 = vpop.eup %2576  ;;  %v891_v32 = vadd.f32 1.0, %v2575_v26  ;;  %v643_v33 = vpop.f32.mrf.mxu2  ;;  %v894_v36 = vmul.f32 -0.5, %v2575_v26  ;;  %v815_v37 = vmul.f32 1.442695, %v780_v28  ;;  %v897_v56 = vand.u32 2147483647, %v2575_v26 }
 0x1dd   :  { %v884_v34 = vmul.f32 0.6931472, %v2577_v29  ;;  %v3198_v45 = vadd.f32 %v3144_v24, %v643_v33  ;;  %v532_v61 = vmax.f32 %v486_v44, 0.0  ;;  %v1094_v1 = vmul.f32 %v2573_v15, %v1093_v48  ;;  %v3232_v28 = vpop.permute.xlu2 %1651 }
 0x1de   :  { %2582 = vlog2.f32 %v891_v32  ;;  %v895_v54 = vadd.f32 1.0, %v894_v36  ;;  %vm898_vm3 = vcmp.lt.f32.partialorder %v897_v56, 0.0004427343  ;;  %v737_v15 = vmax.f32 %v3161_v43, 0.0  ;;  %v3240_v36 = vpop.permute.xlu1 %1645 }
 0x1df   :  { %v2579_v40 = vpop.eup %2578  ;;  %v890_v42 = vsel %vm889_vm1, %v887_v35, %v884_v34  ;;  %2584 = vpow2.f32 %v815_v37  ;;  %4739 = vst [vmem:[#allocation9_spill] sm:$0xff] %v3198_v45  ;;  %1969 = vrot.lane.b32.xlu2 %v3198_v45, %s2785_s3  ;;  %v749_v57 = vand.u32 2147483647, %v3198_v45  ;;  %v738_v37 = vmax.f32 %v3174_v59, 0.0 }
 0x1e0   :  { %v2581_v46 = vpop.eup %2580  ;;  %v3200_v47 = vadd.f32 %v890_v42, %v714_v39  ;;  %v1098_v50 = vadd.f32 1.0, %v2579_v40  ;;  %v1101_v60 = vmul.f32 -0.5, %v2579_v40  ;;  %v700_v62 = vpop.f32.mrf.mxu3  ;;  %v896_v10 = vmul.f32 %v2575_v26, %v895_v54 }
 0x1e1   :  { %v1091_v55 = vmul.f32 0.6931472, %v2581_v46  ;;  %v781_v3 = vsub.f32 0.0, %v749_v57  ;;  %v1104_v21 = vand.u32 2147483647, %v2579_v40  ;;  %v3226_v22 = vadd.f32 %v3144_v24, %v700_v62 }
 0x1e2   :  { %2586 = vlog2.f32 %v1098_v50  ;;  %v487_v58 = vpop.f32.mrf.mxu1  ;;  %2091 = vrot.lane.b32.xlu1 %v3200_v47, %s2785_s3  ;;  %2013 = vrot.lane.b32.xlu0 %v3205_v51, %s2785_s3  ;;  %v1102_v17 = vadd.f32 1.0, %v1101_v60  ;;  %v771_v50 = vand.u32 2147483647, %v3205_v51  ;;  %vm1212_vm0 = vcmp.eq.f32.partialorder %v3200_v47, inf }
 0x1e3   :  { %v488_v63 = vadd.f32 %v2983_v7, %v487_v58  ;;  %v1097_v12 = vsel %vm3216_vm2, %v1094_v1, %v1091_v55  ;;  %v817_v7 = vmul.f32 1.442695, %v781_v3  ;;  %4743 = vst [vmem:[#allocation11_spill] sm:$0xff] %v3226_v22  ;;  %vm1105_vm4 = vcmp.lt.f32.partialorder %v1104_v21, 0.0004427343  ;;  %v3256_v55 = vpop.permute.xlu0 %1659 }
 0x1e4   :  { %v2583_v0 = vpop.eup %2582  ;;  %v645_v4 = vpop.f32.mrf.mxu2  ;;  %v3228_v23 = vadd.f32 %v1097_v12, %v737_v15  ;;  %v1103_v29 = vmul.f32 %v2579_v40, %v1102_v17  ;;  %v803_v60 = vsub.f32 0.0, %v771_v50  ;;  %v772_v1 = vand.u32 2147483647, %v3226_v22 }
 0x1e5   :  { %v2585_v5 = vpop.eup %2584  ;;  %v893_v8 = vmul.f32 0.6931472, %v2583_v0  ;;  %v533_v11 = vmax.f32 %v488_v63, 0.0  ;;  %v3250_v53 = vadd.f32 %v3144_v24, %v645_v4  ;;  %v3260_v58 = vpop.permute.xlu2 %1657  ;;  %v716_v63 = vmax.f32 %v3184_v14, 0.0 }
 0x1e6   :  { %v900_v13 = vadd.f32 1.0, %v2585_v5  ;;  %v903_v31 = vmul.f32 -0.5, %v2585_v5  ;;  %v906_v48 = vand.u32 2147483647, %v2585_v5  ;;  %v3267_v3 = vpop.permute.xlu1 %1647  ;;  %v717_v17 = vmax.f32 %v3198_v45, 0.0 }
 0x1e7   :  { %v899_v16 = vsel %vm898_vm3, %v896_v10, %v893_v8  ;;  %v553_v18 = vpack.c.bf16 %v533_v11, %v532_v61  ;;  %4745 = vst [vmem:[#allocation13_spill] sm:$0xff] %v3250_v53  ;;  %v861_v8 = vmul.f32 1.442695, %v803_v60  ;;  %vm1488_vm10 = vcmp.eq.f32.partialorder %v3228_v23, inf }
 0x1e8   :  { %v2587_v19 = vpop.eup %2586  ;;  %v3223_v20 = vadd.f32 %v899_v16, %v715_v2  ;;  %2588 = vlog2.f32 %v900_v13  ;;  %v703_v34 = vpop.f32.mrf.mxu3  ;;  %v904_v44 = vadd.f32 1.0, %v903_v31  ;;  %vm907_vm5 = vcmp.lt.f32.partialorder %v906_v48, 0.0004427343 }
 0x1e9   :  { %v1100_v26 = vmul.f32 0.6931472, %v2587_v19  ;;  %2590 = vpow2.f32 %v817_v7  ;;  %687 = vmatmul.bf16.gmra.mxu2 %v553_v18  ;;  %v3246_v40 = vadd.f32 %v3144_v24, %v703_v34  ;;  %v804_v13 = vsub.f32 0.0, %v772_v1 }
 0x1ea   :  { %2093 = vrot.lane.b32.xlu2 %v3223_v20, %s2785_s3  ;;  %2015 = vrot.lane.b32.xlu1 %v3226_v22, %s2785_s3  ;;  %v905_v57 = vmul.f32 %v2585_v5, %v904_v44  ;;  %vm1490_vm12 = vcmp.eq.f32.partialorder %v3228_v23, 0.0  ;;  %vm1214_vm1 = vcmp.eq.f32.partialorder %v3200_v47, 0.0  ;;  %vm1224_vm3 = vcmp.eq.f32.partialorder %v3223_v20, inf }
 0x1eb   :  { %2137 = vrot.lane.b32.xlu0 %v3228_v23, %s2785_s3  ;;  %v1106_v33 = vsel %vm1105_vm4, %v1103_v29, %v1100_v26  ;;  %4744 = vst [vmem:[#allocation12_spill] sm:$0xff] %v3246_v40  ;;  %v3278_v15 = vpop.permute.xlu0 %1665  ;;  %v863_v21 = vmul.f32 1.442695, %v804_v13  ;;  %v750_v26 = vand.u32 2147483647, %v3250_v53 }
 0x1ec   :  { %v648_v32 = vpop.f32.mrf.mxu2  ;;  %v3243_v42 = vadd.f32 %v1106_v33, %v738_v37  ;;  %4747 = vst [vmem:[#allocation15_spill] sm:$0xff] %v3278_v15 }
 0x1ed   :  { %v3270_v5 = vadd.f32 %v3144_v24, %v648_v32  ;;  %v3281_v18 = vpop.permute.xlu2 %1663  ;;  %v773_v32 = vand.u32 2147483647, %v3246_v40 }
 0x1ee   :  { %v2589_v35 = vpop.eup %2588  ;;  %4748 = vst [vmem:[#allocation16_spill] sm:$0xff] %v3281_v18  ;;  %v3293_v34 = vpop.permute.xlu1 %1655 }
 0x1ef   :  { %v2591_v39 = vpop.eup %2590  ;;  %v902_v54 = vmul.f32 0.6931472, %v2589_v35  ;;  %4746 = vst [vmem:[#allocation14_spill] sm:$0xff] %v3270_v5  ;;  %v805_v44 = vsub.f32 0.0, %v773_v32 }
 0x1f0   :  { %v909_v46 = vadd.f32 1.0, %v2591_v39  ;;  %v912_v56 = vmul.f32 -0.5, %v2591_v39  ;;  %v915_v4 = vand.u32 2147483647, %v2591_v39  ;;  %v705_v7 = vpop.f32.mrf.mxu3 }
 0x1f1   :  { %v908_v62 = vsel %vm907_vm5, %v905_v57, %v902_v54  ;;  %v3291_v33 = vadd.f32 %v3144_v24, %v705_v7  ;;  %v865_v60 = vmul.f32 1.442695, %v805_v44  ;;  %vm1226_vm5 = vcmp.eq.f32.partialorder %v3223_v20, 0.0 }
 0x1f2   :  { %2592 = vlog2.f32 %v909_v46  ;;  %2017 = vrot.lane.b32.xlu2 %v3246_v40, %s2785_s3  ;;  %2139 = vrot.lane.b32.xlu1 %v3243_v42, %s2785_s3  ;;  %v913_v0 = vadd.f32 1.0, %v912_v56  ;;  %v3272_v6 = vadd.f32 %v908_v62, %v716_v63  ;;  %vm916_vm6 = vcmp.lt.f32.partialorder %v915_v4, 0.0004427343 }
 0x1f3   :  { %1971 = vrot.lane.b32.xlu0 %v3250_v53, %s2785_s3  ;;  %2594 = vrsqrt.f32 %v3186_v30  ;;  %4749 = vst [vmem:[#allocation17_spill] sm:$0xff] %v3291_v33  ;;  %v3303_v54 = vpop.permute.xlu0 %1671  ;;  %v751_v63 = vand.u32 2147483647, %v3270_v5 }
 0x1f4   :  { %v3262_v61 = vpop.f32.mrf.mxu2  ;;  %v914_v12 = vmul.f32 %v2591_v39, %v913_v0  ;;  %2596 = vpow2.f32 %v861_v8  ;;  %v782_v39 = vsub.f32 0.0, %v750_v26  ;;  %4750 = vst [vmem:[#allocation18_spill] sm:$0xff] %v3303_v54 }
 0x1f5   :  { %2598 = vrsqrt.f32 %v3228_v23  ;;  %v3307_v62 = vpop.permute.xlu2 %1669  ;;  %v783_v7 = vsub.f32 0.0, %v751_v63 }
 0x1f6   :  { %2600 = vpow2.f32 %v863_v21  ;;  %v819_v56 = vmul.f32 1.442695, %v782_v39  ;;  %4751 = vst [vmem:[#allocation19_spill] sm:$0xff] %v3307_v62 }
 0x1f8   :  { %v2593_v2 = vpop.eup %2592  ;;  %v708_v46 = vpop.f32.mrf.mxu3 }
 0x1f9   :  { %v911_v10 = vmul.f32 0.6931472, %v2593_v2  ;;  %v2595_v11 = vpop.eup %2594  ;;  %v3311_v0 = vadd.f32 %v3144_v24, %v708_v46 }
 0x1fa   :  { %1973 = vrot.lane.b32.xlu1 %v3270_v5, %s2785_s3  ;;  %v1194_v19 = vmul.f32 %v2595_v11, %v3186_v30  ;;  %v3298_v37 = vpop.eup %2596 }
 0x1fb   :  { %2095 = vrot.lane.b32.xlu0 %v3272_v6, %s2785_s3  ;;  %v917_v16 = vsel %vm916_vm6, %v914_v12, %v911_v10  ;;  %v1107_v48 = vadd.f32 1.0, %v3298_v37  ;;  %v3305_v57 = vpop.eup %2598  ;;  %4752 = vst [vmem:[#allocation20_spill] sm:$0xff] %v3311_v0  ;;  %v3321_v12 = vpop.permute.xlu1 %1661 }
 0x1fc   :  { %v3285_v29 = vpop.f32.mrf.mxu2  ;;  %v3287_v31 = vadd.f32 %v917_v16, %v717_v17  ;;  %v1195_v35 = vmul.f32 %v2595_v11, %v1194_v19  ;;  %v3313_v2 = vpop.eup %2600  ;;  %v1482_v8 = vmul.f32 %v3305_v57, %v3228_v23  ;;  %v1110_v16 = vmul.f32 -0.5, %v3298_v37 }
 0x1fd   :  { %2602 = vlog2.f32 %v1107_v48  ;;  %v1116_v13 = vadd.f32 1.0, %v3313_v2  ;;  %v774_v19 = vand.u32 2147483647, %v3291_v33  ;;  %v1119_v46 = vmul.f32 -0.5, %v3313_v2  ;;  %v3335_v48 = vpop.permute.xlu0 %1677 }
 0x1fe   :  { %v1196_v50 = vmul.f32 0.5, %v1195_v35  ;;  %2604 = vpow2.f32 %v819_v56  ;;  %v1483_v21 = vmul.f32 %v3305_v57, %v1482_v8  ;;  %v821_v35 = vmul.f32 1.442695, %v783_v7  ;;  %4753 = vst [vmem:[#allocation21_spill] sm:$0xff] %v3335_v48 }
 0x1ff   :  { %2606 = vpow2.f32 %v865_v60  ;;  %v1111_v44 = vadd.f32 1.0, %v1110_v16  ;;  %v1113_v60 = vand.u32 2147483647, %v3298_v37  ;;  %v806_v63 = vsub.f32 0.0, %v774_v19 }
 0x200   :  { %v1197_v1 = vsub.f32 1.5, %v1196_v50  ;;  %2608 = vlog2.f32 %v1116_v13  ;;  %v3348_v7 = vadd.f32 %v3144_v24, %v3262_v61  ;;  %v1484_v16 = vmul.f32 0.5, %v1483_v21  ;;  %v710_v45 = vpop.f32.mrf.mxu3 }
 0x201   :  { %2610 = vpow2.f32 %v821_v35  ;;  %vm3357_vm9 = vcmp.lt.f32.partialorder %v1113_v60, 0.0004427343  ;;  %v867_v35 = vmul.f32 1.442695, %v806_v63  ;;  %v1122_v60 = vand.u32 2147483647, %v3313_v2 }
 0x202   :  { %2097 = vrot.lane.b32.xlu1 %v3287_v31, %s2785_s3  ;;  %v1198_v10 = vmul.f32 %v2595_v11, %v1197_v1  ;;  %v1203_v11 = vand.u32 2147483648, %v3186_v30  ;;  %v3340_v1 = vpop.permute.xlu2 %1675  ;;  %4755 = vst [vmem:[#allocation23_spill] sm:$0xff] %v3348_v7  ;;  %2612 = vrsqrt.f32 %v3200_v47  ;;  %v775_v21 = vand.u32 2147483647, %v3311_v0 }
 0x203   :  { %2019 = vrot.lane.b32.xlu0 %v3291_v33, %s2785_s3  ;;  %v2603_v32 = vpop.eup %2602  ;;  %4754 = vst [vmem:[#allocation22_spill] sm:$0xff] %v3340_v1  ;;  %vm3391_vm11 = vcmp.lt.f32.partialorder %v1122_v60, 0.0004427343 }
 0x204   :  { %v3315_v4 = vpop.f32.mrf.mxu2  ;;  %v1199_v17 = vmul.f32 %v1198_v10, %v3186_v30  ;;  %v3332_v39 = vpop.eup %2604  ;;  %v1109_v13 = vmul.f32 0.6931472, %v2603_v32 }
 0x205   :  { %v3337_v56 = vpop.eup %2606  ;;  %v918_v19 = vadd.f32 1.0, %v3332_v39  ;;  %v3384_v48 = vpop.permute.xlu0 %1683 }
 0x206   :  { %v1201_v26 = vsel %vm1200_vm7, %v3186_v30, %v1199_v17  ;;  %v739_v30 = vmax.f32 %v3205_v51, 0.0  ;;  %v2609_v61 = vpop.eup %2608  ;;  %v3361_v17 = vpop.permute.xlu1 %1667  ;;  %v1128_v32 = vmul.f32 -0.5, %v3337_v56  ;;  %4760 = vst [vmem:[#allocation26_spill] sm:$0xff] %v3384_v48  ;;  %v807_v48 = vsub.f32 0.0, %v775_v21 }
 0x207   :  { %v1204_v50 = vsel %vm1202_vm8, %v1203_v11, %v1201_v26  ;;  %v1120_v11 = vadd.f32 1.0, %v1119_v46  ;;  %4758 = vst [vmem:[#allocation24_spill] sm:$0xff] %v3361_v17  ;;  %v1485_v46 = vsub.f32 1.5, %v1484_v16  ;;  %2614 = vlog2.f32 %v918_v19 }
 0x208   :  { %v1737_v8 = vmul.f32 %v3180_v9, %v1204_v50  ;;  %v1112_v9 = vmul.f32 %v3298_v37, %v1111_v44  ;;  %v1125_v50 = vadd.f32 1.0, %v3337_v56  ;;  %v752_v44 = vand.u32 2147483647, %v3348_v7 }
 0x209   :  { %v1118_v26 = vmul.f32 0.6931472, %v2609_v61  ;;  %v1121_v63 = vmul.f32 %v3313_v2, %v1120_v11  ;;  %v924_v16 = vand.u32 2147483647, %v3332_v39  ;;  %v3382_v19 = vadd.f32 %v3144_v24, %v3285_v29 }
 0x20a   :  { %2021 = vrot.lane.b32.xlu1 %v3311_v0, %s2785_s3  ;;  %1801 = vrot.lane.b32.xlu2 %v1737_v8, %s2786_s13  ;;  %v1115_v37 = vsel %vm3357_vm9, %v1112_v9, %v1109_v13  ;;  %v921_v8 = vmul.f32 -0.5, %v3332_v39  ;;  %2616 = vlog2.f32 %v1125_v50  ;;  %v3374_v13 = vpop.eup %2610  ;;  %v784_v61 = vsub.f32 0.0, %v752_v44  ;;  %v3396_v29 = vpop.permute.xlu2 %1681 }
 0x20b   :  { %v3376_v9 = vadd.f32 %v1115_v37, %v739_v30  ;;  %2618 = vpow2.f32 %v867_v35  ;;  %4759 = vst [vmem:[#allocation25_spill] sm:$0xff] %v3382_v19  ;;  %v1486_v2 = vmul.f32 %v3305_v57, %v1485_v46  ;;  %v3388_v11 = vadd.f32 %v3144_v24, %v710_v45  ;;  %v2613_v57 = vpop.eup %2612 }
 0x20c   :  { %v3343_v10 = vpop.f32.mrf.mxu2  ;;  %2620 = vrsqrt.f32 %v3243_v42  ;;  %v922_v50 = vadd.f32 1.0, %v921_v8  ;;  %v1129_v35 = vadd.f32 1.0, %v1128_v32  ;;  %v1131_v37 = vand.u32 2147483647, %v3337_v56  ;;  %4764 = vst [vmem:[#allocation28_spill] sm:$0xff] %v3396_v29 }
 0x20d   :  { %4761 = vst [vmem:[#allocation27_spill] sm:$0xff] %v3388_v11  ;;  %v1124_v45 = vsel %vm3391_vm11, %v1121_v63, %v1118_v26  ;;  %v927_v46 = vadd.f32 1.0, %v3374_v13  ;;  %v2615_v32 = vpop.eup %2614  ;;  %vm3407_vm13 = vcmp.lt.f32.partialorder %v924_v16, 0.0004427343  ;;  %v930_v29 = vmul.f32 -0.5, %v3374_v13 }
 0x20e   :  { %v753_v54 = vand.u32 2147483647, %v3382_v19  ;;  %v823_v26 = vmul.f32 1.442695, %v784_v61  ;;  %v1487_v63 = vmul.f32 %v1486_v2, %v3228_v23  ;;  %v776_v60 = vand.u32 2147483647, %v3388_v11  ;;  %v3433_v2 = vpop.permute.xlu1 %1673 }
 0x20f   :  { %v1206_v21 = vmul.f32 %v2613_v57, %v3200_v47  ;;  %v4767_v16 = vmax.f32 %v3226_v22, 0.0  ;;  %v3424_v62 = vmul.f32 %v3332_v39, %v922_v50  ;;  %v3427_v1 = vmul.f32 %v3337_v56, %v1129_v35  ;;  %4770 = vst [vmem:[#allocation29_spill] sm:$0xff] %v3433_v2 }
 0x210   :  { %v2617_v30 = vpop.eup %2616  ;;  %vm3429_vm14 = vcmp.lt.f32.partialorder %v1131_v37, 0.0004427343  ;;  %2622 = vlog2.f32 %v927_v46  ;;  %v933_v17 = vand.u32 2147483647, %v3374_v13  ;;  %v869_v22 = vmul.f32 1.442695, %v807_v48 }
 0x211   :  { %v3417_v51 = vpop.eup %2618  ;;  %v3421_v59 = vadd.f32 %v1124_v45, %v4767_v16  ;;  %v1207_v45 = vmul.f32 %v2613_v57, %v1206_v21  ;;  %v920_v16 = vmul.f32 0.6931472, %v2615_v32  ;;  %v931_v15 = vadd.f32 1.0, %v930_v29  ;;  %v1690_v29 = vpop.permute.xlu0 %1689 }
 0x212   :  { %2141 = vrot.lane.b32.xlu2 %v3376_v9, %s2785_s3  ;;  %v3435_v14 = vpop.eup %2620  ;;  %v785_v39 = vsub.f32 0.0, %v753_v54  ;;  %2624 = vrsqrt.f32 %v3223_v20  ;;  %v1489_v56 = vsel %vm1488_vm10, %v3228_v23, %v1487_v63  ;;  %v808_v50 = vsub.f32 0.0, %v776_v60  ;;  %v3458_v21 = vpop.permute.xlu2 %1687 }
 0x213   :  { %2626 = vpow2.f32 %v823_v26  ;;  %v1208_v35 = vmul.f32 0.5, %v1207_v45  ;;  %v1127_v37 = vmul.f32 0.6931472, %v2617_v30  ;;  %v1134_v2 = vadd.f32 1.0, %v3417_v51  ;;  %4774 = vst [vmem:[#allocation30_spill] sm:$0xff] %v3458_v21 }
 0x214   :  { %v3400_v44 = vpop.f32.mrf.mxu2  ;;  %v1494_v46 = vmul.f32 %v3435_v14, %v3243_v42  ;;  %2628 = vrsqrt.f32 %v3376_v9  ;;  %v1137_v54 = vmul.f32 -0.5, %v3417_v51  ;;  %vm3450_vm15 = vcmp.lt.f32.partialorder %v933_v17, 0.0004427343 }
 0x215   :  { %2630 = vpow2.f32 %v869_v22  ;;  %v1209_v32 = vsub.f32 1.5, %v1208_v35  ;;  %v4773_v30 = vand.u32 2147483648, %v3228_v23  ;;  %v825_v63 = vmul.f32 1.442695, %v785_v39 }
 0x216   :  { %v3462_v45 = vadd.f32 %v3144_v24, %v3315_v4  ;;  %v2623_v22 = vpop.eup %2622  ;;  %v926_v17 = vsel %vm3407_vm13, %v3424_v62, %v920_v16  ;;  %v932_v35 = vmul.f32 %v3374_v13, %v931_v15  ;;  %v871_v52 = vmul.f32 1.442695, %v808_v50 }
 0x217   :  { %v1492_v26 = vsel %vm1490_vm12, %v4773_v30, %v1489_v56  ;;  %v1210_v38 = vmul.f32 %v2613_v57, %v1209_v32  ;;  %v1133_v39 = vsel %vm3429_vm14, %v3427_v1, %v1127_v37  ;;  %2632 = vlog2.f32 %v1134_v2  ;;  %v3481_v57 = vpop.permute.xlu1 %1679 }
 0x218   :  { %4775 = vst [vmem:[#allocation31_spill] sm:$0xff] %v3462_v45  ;;  %v2625_v23 = vpop.eup %2624  ;;  %v1140_v4 = vand.u32 2147483647, %v3417_v51  ;;  %v1495_v56 = vmul.f32 %v3435_v14, %v1494_v46  ;;  %v1138_v21 = vadd.f32 1.0, %v1137_v54  ;;  %v1761_v18 = vmul.f32 %v1690_v29, %v1492_v26 }
 0x219   :  { %v3475_v30 = vpop.eup %2626  ;;  %v1211_v62 = vmul.f32 %v1210_v38, %v3200_v47  ;;  %v1218_v15 = vmul.f32 %v2625_v23, %v3223_v20  ;;  %4776 = vst [vmem:[#allocation32_spill] sm:$0xff] %v3481_v57  ;;  %2634 = vpow2.f32 %v825_v63  ;;  %v754_v1 = vand.u32 2147483647, %v3462_v45 }
 0x21a   :  { %1975 = vrot.lane.b32.xlu2 %v3348_v7, %s2785_s3  ;;  %v3479_v13 = vpop.eup %2628  ;;  %v1215_v8 = vand.u32 2147483648, %v3200_v47  ;;  %v929_v2 = vmul.f32 0.6931472, %v2623_v22  ;;  %2636 = vpow2.f32 %v871_v52  ;;  %v936_v38 = vadd.f32 1.0, %v3475_v30 }
 0x21b   :  { %v3486_v61 = vpop.eup %2630  ;;  %v1213_v16 = vsel %vm1212_vm0, %v3200_v47, %v1211_v62  ;;  %v1496_v50 = vmul.f32 0.5, %v1495_v56  ;;  %v1219_v46 = vmul.f32 %v2625_v23, %v1218_v15  ;;  %v1506_v54 = vmul.f32 %v3479_v13, %v3376_v9 }
 0x21c   :  { %v3464_v48 = vpop.f32.mrf.mxu2  ;;  %v1216_v37 = vsel %vm1214_vm1, %v1215_v8, %v1213_v16  ;;  %v3497_v32 = vadd.f32 %v3144_v24, %v3343_v10  ;;  %2638 = vrsqrt.f32 %v3421_v59  ;;  %v4778_v47 = vmax.f32 %v3250_v53, 0.0 }
 0x21d   :  { %v1738_v29 = vmul.f32 %v3194_v41, %v1216_v37  ;;  %v2633_v52 = vpop.eup %2632  ;;  %v1143_v63 = vadd.f32 1.0, %v3486_v61  ;;  %v786_v22 = vsub.f32 0.0, %v754_v1  ;;  %v4779_v56 = vmax.f32 %v3246_v40, 0.0 }
 0x21e   :  { %4777 = vst [vmem:[#allocation33_spill] sm:$0xff] %v3497_v32  ;;  %v3502_v26 = vadd.f32 %v926_v17, %v4778_v47  ;;  %v935_v41 = vsel %vm3450_vm15, %v932_v35, %v929_v2  ;;  %vm3511_vm2 = vcmp.lt.f32.partialorder %v1140_v4, 0.0004427343  ;;  %v939_v15 = vmul.f32 -0.5, %v3475_v30 }
 0x21f   :  { %v3507_v62 = vadd.f32 %v1133_v39, %v4779_v56  ;;  %1803 = vrot.lane.b32.xlu0 %v1738_v29, %s2786_s13  ;;  %v3517_v17 = vpop.eup %2634  ;;  %v1139_v1 = vmul.f32 %v3417_v51, %v1138_v21  ;;  %v1497_v16 = vsub.f32 1.5, %v1496_v50  ;;  %v3521_v39 = vpop.permute.xlu2 %1693  ;;  %2640 = vlog2.f32 %v936_v38 }
 0x220   :  { %v3525_v35 = vpop.eup %2636  ;;  %v942_v4 = vand.u32 2147483647, %v3475_v30  ;;  %v1507_v2 = vmul.f32 %v3479_v13, %v1506_v54  ;;  %v4782_v29 = vmax.f32 %v3270_v5, 0.0  ;;  %2642 = vlog2.f32 %v1143_v63  ;;  %v3538_v57 = vpop.permute.xlu1 %1685 }
 0x221   :  { %v827_v21 = vmul.f32 1.442695, %v786_v22  ;;  %v940_v56 = vadd.f32 1.0, %v939_v15  ;;  %v1146_v8 = vmul.f32 -0.5, %v3486_v61  ;;  %v1149_v38 = vand.u32 2147483647, %v3486_v61 }
 0x222   :  { %1849 = vrot.lane.b32.xlu2 %v1761_v18, %s2786_s13  ;;  %v1220_v18 = vmul.f32 0.5, %v1219_v46  ;;  %v755_v46 = vand.u32 2147483647, %v3497_v32  ;;  %v3532_v51 = vadd.f32 %v935_v41, %v4782_v29  ;;  %v3534_v47 = vpop.eup %2638  ;;  %4783 = vst [vmem:[#allocation34_spill] sm:$0xff] %v3538_v57  ;;  %v945_v54 = vadd.f32 1.0, %v3517_v17 }
 0x223   :  { %v1152_v40 = vadd.f32 1.0, %v3525_v35  ;;  %v1498_v41 = vmul.f32 %v3435_v14, %v1497_v16  ;;  %v1227_v22 = vand.u32 2147483648, %v3223_v20  ;;  %vm3548_vm4 = vcmp.lt.f32.partialorder %v942_v4, 0.0004427343 }
 0x224   :  { %v1221_v37 = vsub.f32 1.5, %v1220_v18  ;;  %v3523_v60 = vpop.f32.mrf.mxu2  ;;  %v1136_v18 = vmul.f32 0.6931472, %v2633_v52  ;;  %v787_v52 = vsub.f32 0.0, %v755_v46  ;;  %2644 = vpow2.f32 %v827_v21 }
 0x225   :  { %v2641_v16 = vpop.eup %2640  ;;  %v1147_v46 = vadd.f32 1.0, %v1146_v8  ;;  %v3562_v21 = vmul.f32 %v3475_v30, %v940_v56  ;;  %2646 = vlog2.f32 %v945_v54  ;;  %v4787_v30 = vmax.f32 %v3291_v33, 0.0 }
 0x226   :  { %v1222_v50 = vmul.f32 %v2625_v23, %v1221_v37  ;;  %v1508_v23 = vmul.f32 0.5, %v1507_v2  ;;  %v1518_v37 = vmul.f32 %v3534_v47, %v3421_v59  ;;  %v1142_v2 = vsel %vm3511_vm2, %v1139_v1, %v1136_v18  ;;  %v2643_v4 = vpop.eup %2642 }
 0x227   :  { %2143 = vrot.lane.b32.xlu0 %v3421_v59, %s2785_s3  ;;  %v3566_v57 = vpop.permute.xlu2 %1699  ;;  %v1499_v1 = vmul.f32 %v1498_v41, %v3243_v42  ;;  %v829_v18 = vmul.f32 1.442695, %v787_v52  ;;  %v3577_v56 = vadd.f32 %v1142_v2, %v4787_v30  ;;  %vm3579_vm6 = vcmp.lt.f32.partialorder %v1149_v38, 0.0004427343 }
 0x228   :  { %v1223_v63 = vmul.f32 %v1222_v50, %v3223_v20  ;;  %v1509_v8 = vsub.f32 1.5, %v1508_v23  ;;  %2648 = vlog2.f32 %v1152_v40  ;;  %v938_v41 = vmul.f32 0.6931472, %v2641_v16 }
 0x229   :  { %v1145_v23 = vmul.f32 0.6931472, %v2643_v4  ;;  %v1148_v52 = vmul.f32 %v3486_v61, %v1147_v46  ;;  %vm1500_vm7 = vcmp.eq.f32.partialorder %v3243_v42, inf  ;;  %vm1502_vm8 = vcmp.eq.f32.partialorder %v3243_v42, 0.0  ;;  %v1692_v46 = vpop.permute.xlu1 %1691 }
 0x22a   :  { %2099 = vrot.lane.b32.xlu2 %v3502_v26, %s2785_s3  ;;  %v1225_v14 = vsel %vm1224_vm3, %v3223_v20, %v1223_v63  ;;  %v948_v63 = vmul.f32 -0.5, %v3517_v17  ;;  %v1503_v38 = vand.u32 2147483648, %v3243_v42  ;;  %v1501_v40 = vsel %vm1500_vm7, %v3243_v42, %v1499_v1 }
 0x22b   :  { %v1228_v50 = vsel %vm1226_vm5, %v1227_v22, %v1225_v14  ;;  %v3573_v22 = vadd.f32 %v3144_v24, %v3400_v44  ;;  %v3587_v24 = vpop.eup %2644  ;;  %v1155_v14 = vmul.f32 -0.5, %v3525_v35  ;;  %2650 = vpow2.f32 %v829_v18 }
 0x22c   :  { %v1739_v20 = vmul.f32 %v3240_v36, %v1228_v50  ;;  %v3568_v10 = vpop.f32.mrf.mxu2  ;;  %v1519_v36 = vmul.f32 %v3534_v47, %v1518_v37  ;;  %v949_v44 = vadd.f32 1.0, %v948_v63  ;;  %v1510_v37 = vmul.f32 %v3479_v13, %v1509_v8  ;;  %v2647_v16 = vpop.eup %2646 }
 0x22d   :  { %4786 = vst [vmem:[#allocation35_spill] sm:$0xff] %v3573_v22  ;;  %v756_v61 = vand.u32 2147483647, %v3573_v22  ;;  %v951_v2 = vand.u32 2147483647, %v3517_v17  ;;  %vm1512_vm9 = vcmp.eq.f32.partialorder %v3376_v9, inf  ;;  %2652 = vrsqrt.f32 %v3577_v56 }
 0x22e   :  { %1805 = vrot.lane.b32.xlu1 %v1739_v20, %s2786_s13  ;;  %v1520_v50 = vmul.f32 0.5, %v1519_v36  ;;  %v944_v4 = vsel %vm3548_vm4, %v3562_v21, %v938_v41  ;;  %v1151_v63 = vsel %vm3579_vm6, %v1148_v52, %v1145_v23  ;;  %v954_v13 = vadd.f32 1.0, %v3587_v24  ;;  %v2649_v20 = vpop.eup %2648 }
 0x22f   :  { %1977 = vrot.lane.b32.xlu0 %v3382_v19, %s2785_s3  ;;  %2654 = vrsqrt.f32 %v3272_v6  ;;  %v950_v1 = vmul.f32 %v3517_v17, %v949_v44  ;;  %v1156_v8 = vadd.f32 1.0, %v1155_v14  ;;  %v1504_v18 = vsel %vm1502_vm8, %v1503_v38, %v1501_v40  ;;  %v3625_v41 = vpop.permute.xlu2 %1963 }
 0x230   :  { %2656 = vrsqrt.f32 %v3507_v62  ;;  %v947_v21 = vmul.f32 0.6931472, %v2647_v16  ;;  %v1511_v30 = vmul.f32 %v1510_v37, %v3376_v9  ;;  %v788_v54 = vsub.f32 0.0, %v756_v61  ;;  %4792 = vst [vmem:[#allocation36_spill] sm:$0xff] %v3625_v41 }
 0x231   :  { %2658 = vrsqrt.f32 %v3287_v31  ;;  %vm3617_vm10 = vcmp.lt.f32.partialorder %v951_v2, 0.0004427343  ;;  %v1158_v17 = vand.u32 2147483647, %v3525_v35  ;;  %vm1514_vm11 = vcmp.eq.f32.partialorder %v3376_v9, 0.0  ;;  %v3627_v23 = vpop.eup %2650 }
 0x232   :  { %2023 = vrot.lane.b32.xlu2 %v3388_v11, %s2785_s3  ;;  %v1521_v42 = vsub.f32 1.5, %v1520_v50  ;;  %v1154_v52 = vmul.f32 0.6931472, %v2649_v20  ;;  %2660 = vlog2.f32 %v954_v13  ;;  %v957_v44 = vmul.f32 -0.5, %v3587_v24 }
 0x233   :  { %v1515_v14 = vand.u32 2147483648, %v3376_v9  ;;  %v3631_v38 = vpop.eup %2652  ;;  %v4793_v40 = vmax.f32 %v3348_v7, 0.0  ;;  %v4794_v61 = vmax.f32 %v3311_v0, 0.0  ;;  %v1762_v2 = vmul.f32 %v1692_v46, %v1504_v18 }
 0x234   :  { %v3613_v15 = vpop.f32.mrf.mxu2  ;;  %v953_v13 = vsel %vm3617_vm10, %v950_v1, %v947_v21  ;;  %v1157_v20 = vmul.f32 %v3525_v35, %v1156_v8  ;;  %v1513_v33 = vsel %vm1512_vm9, %v3376_v9, %v1511_v30  ;;  %v831_v7 = vmul.f32 1.442695, %v788_v54  ;;  %v3657_v1 = vpop.permute.xlu1 %1697 }
 0x235   :  { %v3635_v37 = vadd.f32 %v944_v4, %v4793_v40  ;;  %v3639_v16 = vadd.f32 %v1151_v63, %v4794_v61  ;;  %v2655_v29 = vpop.eup %2654  ;;  %vm3650_vm12 = vcmp.lt.f32.partialorder %v1158_v17, 0.0004427343  ;;  %v960_v46 = vand.u32 2147483647, %v3587_v24 }
 0x236   :  { %2145 = vrot.lane.b32.xlu1 %v3507_v62, %s2785_s3  ;;  %v3648_v4 = vpop.eup %2656  ;;  %v1522_v18 = vmul.f32 %v3534_v47, %v1521_v42  ;;  %v1160_v8 = vsel %vm3650_vm12, %v1157_v20, %v1154_v52  ;;  %v958_v21 = vadd.f32 1.0, %v957_v44  ;;  %vm1524_vm13 = vcmp.eq.f32.partialorder %v3421_v59, inf }
 0x237   :  { %v2659_v35 = vpop.eup %2658  ;;  %v1527_v30 = vand.u32 2147483648, %v3421_v59  ;;  %1851 = vrot.lane.b32.xlu0 %v1762_v2, %s2786_s13  ;;  %v4797_v54 = vmax.f32 %v3382_v19, 0.0  ;;  %v1516_v47 = vsel %vm1514_vm11, %v1515_v14, %v1513_v33  ;;  %v966_v17 = vmul.f32 -0.5, %v3627_v23  ;;  %v3691_v40 = vpop.permute.xlu2 %2011 }
 0x238   :  { %vm1526_vm14 = vcmp.eq.f32.partialorder %v3421_v59, 0.0  ;;  %v1230_v42 = vmul.f32 %v2655_v29, %v3272_v6  ;;  %v2661_v52 = vpop.eup %2660  ;;  %2662 = vpow2.f32 %v831_v7  ;;  %v1542_v44 = vmul.f32 %v3631_v38, %v3577_v56  ;;  %4801 = vst [vmem:[#allocation37_spill] sm:$0xff] %v3691_v40 }
 0x239   :  { %v3666_v36 = vadd.f32 %v953_v13, %v4797_v54  ;;  %v1530_v61 = vmul.f32 %v3648_v4, %v3507_v62  ;;  %v1242_v2 = vmul.f32 %v2659_v35, %v3287_v31  ;;  %v4798_v33 = vmax.f32 %v3388_v11, 0.0  ;;  %v3707_v11 = vpop.permute.xlu0 %1695 }
 0x23a   :  { %vm3684_vm15 = vcmp.lt.f32.partialorder %v960_v46, 0.0004427343  ;;  %v1523_v7 = vmul.f32 %v1522_v18, %v3421_v59  ;;  %v1231_v20 = vmul.f32 %v2655_v29, %v1230_v42  ;;  %v3694_v54 = vmul.f32 %v3587_v24, %v958_v21  ;;  %v3700_v46 = vld [vmem:[%s4710_s4 + $0x2] ss:$0 sm:$0xff]  ;;  %s2787_s4 = smov [#allocation2]  }
 0x23b   :  { %v3682_v9 = vadd.f32 %v1160_v8, %v4798_v33  ;;  %v1763_v63 = vmul.f32 %v3521_v39, %v1516_v47  ;;  %v3704_v8 = vadd.f32 %v3700_v46, %v3464_v48  ;;  %v1243_v18 = vmul.f32 %v2659_v35, %v1242_v2 }
 0x23c   :  { %v3678_v13 = vpop.f32.mrf.mxu2  ;;  %v956_v33 = vmul.f32 0.6931472, %v2661_v52  ;;  %v963_v42 = vadd.f32 1.0, %v3627_v23  ;;  %v967_v50 = vadd.f32 1.0, %v966_v17  ;;  %v1232_v0 = vmul.f32 0.5, %v1231_v20  ;;  %v3720_v17 = vpop.permute.xlu1 %1703 }
 0x23d   :  { %v1543_v24 = vmul.f32 %v3631_v38, %v1542_v44  ;;  %v1531_v39 = vmul.f32 %v3648_v4, %v1530_v61  ;;  %v1244_v21 = vmul.f32 0.5, %v1243_v18  ;;  %2664 = vrsqrt.f32 %v3502_v26 }
 0x23e   :  { %1979 = vrot.lane.b32.xlu1 %v3462_v45, %s2785_s3  ;;  %v1525_v48 = vsel %vm1524_vm13, %v3421_v59, %v1523_v7  ;;  %v3718_v52 = vadd.f32 %v3700_v46, %v3523_v60  ;;  %v1233_v2 = vsub.f32 1.5, %v1232_v0  ;;  %v3722_v20 = vpop.eup %2662  ;;  %v969_v44 = vand.u32 2147483647, %v3627_v23 }
 0x23f   :  { %v757_v61 = vand.u32 2147483647, %v3704_v8  ;;  %2666 = vrsqrt.f32 %v3682_v9  ;;  %2101 = vrot.lane.b32.xlu0 %v3532_v51, %s2785_s3  ;;  %v1245_v7 = vsub.f32 1.5, %v1244_v21  ;;  %v962_v60 = vsel %vm3684_vm15, %v3694_v54, %v956_v33  ;;  %v3741_v54 = vpop.permute.xlu2 %1969 }
 0x240   :  { %4802 = vst [vmem:[#allocation38_spill] sm:$0xff] %v3718_v52  ;;  %2668 = vlog2.f32 %v963_v42  ;;  %v3733_v18 = vmul.f32 %v3627_v23, %v967_v50  ;;  %v1234_v0 = vmul.f32 %v2655_v29, %v1233_v2  ;;  %v1528_v47 = vsel %vm1526_vm14, %v1527_v30, %v1525_v48 }
 0x241   :  { %v1544_v19 = vmul.f32 0.5, %v1543_v24  ;;  %v1532_v53 = vmul.f32 0.5, %v1531_v39  ;;  %v1246_v5 = vmul.f32 %v2659_v35, %v1245_v7  ;;  %v972_v40 = vadd.f32 1.0, %v3722_v20  ;;  %4803 = vst [vmem:[#allocation39_spill] sm:$0xff] %v3741_v54  ;;  %v3755_v24 = vpop.permute.xlu0 %1701 }
 0x242   :  { %v758_v41 = vand.u32 2147483647, %v3718_v52  ;;  %v1235_v14 = vmul.f32 %v1234_v0, %v3272_v6  ;;  %2670 = vrsqrt.f32 %v3532_v51  ;;  %v789_v29 = vsub.f32 0.0, %v757_v61 }
 0x243   :  { %v2665_v23 = vpop.eup %2664  ;;  %2672 = vrsqrt.f32 %v3639_v16  ;;  %vm1236_vm0 = vcmp.eq.f32.partialorder %v3272_v6, inf  ;;  %v1239_v59 = vand.u32 2147483648, %v3272_v6  ;;  %vm1238_vm1 = vcmp.eq.f32.partialorder %v3272_v6, 0.0 }
 0x244   :  { %v3747_v50 = vpop.f32.mrf.mxu2  ;;  %v1237_v35 = vsel %vm1236_vm0, %v3272_v6, %v1235_v14  ;;  %v1254_v30 = vmul.f32 %v2665_v23, %v3502_v26  ;;  %v1533_v42 = vsub.f32 1.5, %v1532_v53  ;;  %vm1248_vm2 = vcmp.eq.f32.partialorder %v3287_v31, inf }
 0x245   :  { %v3753_v33 = vpop.eup %2666  ;;  %v1240_v39 = vsel %vm1238_vm1, %v1239_v59, %v1237_v35  ;;  %v1251_v21 = vand.u32 2147483648, %v3287_v31  ;;  %vm1250_vm3 = vcmp.eq.f32.partialorder %v3287_v31, 0.0  ;;  %v1545_v6 = vsub.f32 1.5, %v1544_v19 }
 0x246   :  { %1853 = vrot.lane.b32.xlu1 %v1763_v63, %s2786_s13  ;;  %v1247_v63 = vmul.f32 %v1246_v5, %v3287_v31  ;;  %v2669_v48 = vpop.eup %2668  ;;  %v1740_v2 = vmul.f32 %v3267_v3, %v1240_v39  ;;  %v1255_v5 = vmul.f32 %v2665_v23, %v1254_v30  ;;  %v790_v7 = vsub.f32 0.0, %v758_v41 }
 0x247   :  { %v3764_v53 = vadd.f32 %v3700_v46, %v3568_v10  ;;  %v4805_v59 = vmax.f32 %v3462_v45, 0.0  ;;  %vm3772_vm4 = vcmp.lt.f32.partialorder %v969_v44, 0.0004427343  ;;  %v1566_v19 = vmul.f32 %v3753_v33, %v3682_v9  ;;  %v3780_v10 = vpop.permute.xlu1 %1961 }
 0x248   :  { %v1249_v61 = vsel %vm1248_vm2, %v3287_v31, %v1247_v63  ;;  %v3766_v14 = vpop.eup %2670  ;;  %1807 = vrot.lane.b32.xlu2 %v1740_v2, %s2786_s13  ;;  %vm1536_vm5 = vcmp.eq.f32.partialorder %v3507_v62, inf  ;;  %v1256_v44 = vmul.f32 0.5, %v1255_v5  ;;  %v3789_v39 = vmul.f32 %v3707_v11, %v1528_v47 }
 0x249   :  { %4804 = vst [vmem:[#allocation40_spill] sm:$0xff] %v3764_v53  ;;  %v1252_v0 = vsel %vm1250_vm3, %v1251_v21, %v1249_v61  ;;  %v3770_v35 = vadd.f32 %v962_v60, %v4805_v59  ;;  %v3783_v63 = vpop.eup %2672  ;;  %v833_v60 = vmul.f32 1.442695, %v789_v29  ;;  %v1266_v30 = vmul.f32 %v3766_v14, %v3532_v51 }
 0x24a   :  { %v1741_v41 = vmul.f32 %v3202_v49, %v1252_v0  ;;  %2674 = vlog2.f32 %v972_v40  ;;  %v975_v21 = vmul.f32 -0.5, %v3722_v20  ;;  %v1534_v2 = vmul.f32 %v3648_v4, %v1533_v42  ;;  %v3796_v49 = vpop.permute.xlu2 %2093 }
 0x24b   :  { %4808 = vst [vmem:[#allocation41_spill] sm:$0xff] %v3796_v49  ;;  %v1546_v29 = vmul.f32 %v3631_v38, %v1545_v6  ;;  %vm1548_vm6 = vcmp.eq.f32.partialorder %v3577_v56, inf  ;;  %v835_v61 = vmul.f32 1.442695, %v790_v7  ;;  %v759_v11 = vand.u32 2147483647, %v3764_v53  ;;  %v3808_v7 = vpop.permute.xlu0 %1965 }
 0x24c   :  { %1809 = vrot.lane.b32.xlu0 %v1741_v41, %s2786_s13  ;;  %v1257_v47 = vsub.f32 1.5, %v1256_v44  ;;  %v965_v40 = vmul.f32 0.6931472, %v2669_v48  ;;  %vm1538_vm7 = vcmp.eq.f32.partialorder %v3507_v62, 0.0  ;;  %v1539_v4 = vand.u32 2147483648, %v3507_v62  ;;  %4809 = vst [vmem:[#allocation42_spill] sm:$0xff] %v3808_v7  ;;  %v3810_v59 = vpop.f32.mrf.mxu2 }
 0x24d   :  { %v1567_v42 = vmul.f32 %v3753_v33, %v1566_v19  ;;  %v1267_v5 = vmul.f32 %v3766_v14, %v1266_v30  ;;  %2676 = vpow2.f32 %v833_v60  ;;  %v1554_v38 = vmul.f32 %v3783_v63, %v3639_v16 }
 0x24e   :  { %2103 = vrot.lane.b32.xlu1 %v3635_v37, %s2785_s3  ;;  %v1258_v6 = vmul.f32 %v2665_v23, %v1257_v47  ;;  %v976_v48 = vadd.f32 1.0, %v975_v21  ;;  %vm1550_vm8 = vcmp.eq.f32.partialorder %v3577_v56, 0.0  ;;  %v1535_v41 = vmul.f32 %v1534_v2, %v3507_v62 }
 0x24f   :  { %v3816_v19 = vadd.f32 %v3700_v46, %v3613_v15  ;;  %2678 = vrsqrt.f32 %v3635_v37  ;;  %v1547_v60 = vmul.f32 %v1546_v29, %v3577_v56  ;;  %v791_v44 = vsub.f32 0.0, %v759_v11  ;;  %v3825_v2 = vpop.permute.xlu1 %2009 }
 0x250   :  { %2680 = vpow2.f32 %v835_v61  ;;  %v1259_v23 = vmul.f32 %v1258_v6, %v3502_v26  ;;  %v2675_v30 = vpop.eup %2674  ;;  %v1568_v47 = vmul.f32 0.5, %v1567_v42  ;;  %1981 = vrot.lane.b32.xlu2 %v3497_v32, %s2785_s3  ;;  %vm1260_vm9 = vcmp.eq.f32.partialorder %v3502_v26, inf }
 0x251   :  { %v1263_v21 = vand.u32 2147483648, %v3502_v26  ;;  %v1268_v15 = vmul.f32 0.5, %v1267_v5  ;;  %v1555_v0 = vmul.f32 %v3783_v63, %v1554_v38  ;;  %vm1262_vm10 = vcmp.eq.f32.partialorder %v3502_v26, 0.0 }
 0x252   :  { %v1261_v29 = vsel %vm1260_vm9, %v3502_v26, %v1259_v23  ;;  %2682 = vrsqrt.f32 %v3666_v36  ;;  %v978_v61 = vand.u32 2147483647, %v3722_v20  ;;  %v1537_v11 = vsel %vm1536_vm5, %v3507_v62, %v1535_v41  ;;  %v3849_v49 = vpop.permute.xlu2 %2017 }
 0x253   :  { %v760_v42 = vand.u32 2147483647, %v3816_v19  ;;  %v1264_v6 = vsel %vm1262_vm10, %v1263_v21, %v1261_v29  ;;  %v3838_v5 = vpop.eup %2676  ;;  %v971_v26 = vsel %vm3772_vm4, %v3733_v18, %v965_v40  ;;  %v974_v38 = vmul.f32 0.6931472, %v2675_v30 }
 0x254   :  { %1983 = vrot.lane.b32.xlu0 %v3573_v22, %s2785_s3  ;;  %v837_v23 = vmul.f32 1.442695, %v791_v44  ;;  %v1742_v31 = vmul.f32 %v3232_v28, %v1264_v6  ;;  %v977_v54 = vmul.f32 %v3722_v20, %v976_v48  ;;  %v1549_v41 = vsel %vm1548_vm6, %v3577_v56, %v1547_v60  ;;  %v3856_v28 = vpop.permute.xlu0 %2089 }
 0x255   :  { %v2679_v45 = vpop.eup %2678  ;;  %v1269_v29 = vsub.f32 1.5, %v1268_v15  ;;  %v1540_v18 = vsel %vm1538_vm7, %v1539_v4, %v1537_v11  ;;  %v1569_v3 = vsub.f32 1.5, %v1568_v47  ;;  %v1556_v40 = vmul.f32 0.5, %v1555_v0 }
 0x256   :  { %v3851_v7 = vpop.eup %2680  ;;  %1811 = vrot.lane.b32.xlu1 %v1742_v31, %s2786_s13  ;;  %v1278_v20 = vmul.f32 %v2679_v45, %v3635_v37  ;;  %v4810_v48 = vmax.f32 %v3497_v32, 0.0  ;;  %vm3863_vm11 = vcmp.lt.f32.partialorder %v978_v61, 0.0004427343  ;;  %v1575_v30 = vand.u32 2147483648, %v3682_v9  ;;  %v3877_v61 = vpop.f32.mrf.mxu2 }
 0x257   :  { %v792_v62 = vsub.f32 0.0, %v760_v42  ;;  %v980_v31 = vsel %vm3863_vm11, %v977_v54, %v974_v38  ;;  %v4813_v0 = vand.u32 2147483648, %v3577_v56  ;;  %v981_v15 = vadd.f32 1.0, %v3838_v5  ;;  %v3886_v54 = vpop.permute.xlu1 %1967 }
 0x258   :  { %v3861_v60 = vadd.f32 %v971_v26, %v4810_v48  ;;  %v3868_v4 = vpop.eup %2682  ;;  %2684 = vpow2.f32 %v837_v23  ;;  %v1765_v11 = vmul.f32 %v3657_v1, %v1540_v18  ;;  %1855 = vrot.lane.b32.xlu2 %v3789_v39, %s2786_s13  ;;  %v3884_v42 = vadd.f32 %v3700_v46, %v3678_v13 }
 0x259   :  { %v1552_v47 = vsel %vm1550_vm8, %v4813_v0, %v1549_v41  ;;  %v1270_v6 = vmul.f32 %v3766_v14, %v1269_v29  ;;  %v1279_v26 = vmul.f32 %v2679_v45, %v1278_v20  ;;  %v990_v38 = vadd.f32 1.0, %v3851_v7 }
 0x25a   :  { %4814 = vst [vmem:[#allocation43_spill] sm:$0xff] %v3884_v42  ;;  %v1570_v23 = vmul.f32 %v3753_v33, %v1569_v3  ;;  %v1557_v41 = vsub.f32 1.5, %v1556_v40  ;;  %v3893_v1 = vmul.f32 %v3566_v57, %v1552_v47  ;;  %v839_v39 = vmul.f32 1.442695, %v792_v62 }
 0x25b   :  { %v1280_v13 = vmul.f32 0.5, %v1279_v26  ;;  %v1290_v18 = vmul.f32 %v3868_v4, %v3666_v36  ;;  %v4815_v14 = vmax.f32 %v3573_v22, 0.0  ;;  %v984_v20 = vmul.f32 -0.5, %v3838_v5 }
 0x25c   :  { %1857 = vrot.lane.b32.xlu0 %v1765_v11, %s2786_s13  ;;  %v987_v33 = vand.u32 2147483647, %v3838_v5  ;;  %v993_v3 = vmul.f32 -0.5, %v3851_v7  ;;  %vm1572_vm12 = vcmp.eq.f32.partialorder %v3682_v9, inf  ;;  %2686 = vlog2.f32 %v981_v15  ;;  %v3921_v26 = vpop.permute.xlu0 %2013 }
 0x25d   :  { %v3900_v29 = vadd.f32 %v980_v31, %v4815_v14  ;;  %v761_v57 = vand.u32 2147483647, %v3884_v42  ;;  %v1271_v40 = vmul.f32 %v1270_v6, %v3532_v51  ;;  %v1281_v44 = vsub.f32 1.5, %v1280_v13 }
 0x25e   :  { %v3908_v62 = vpop.eup %2684  ;;  %2688 = vlog2.f32 %v990_v38  ;;  %v1571_v31 = vmul.f32 %v1570_v23, %v3682_v9  ;;  %v1558_v0 = vmul.f32 %v3783_v63, %v1557_v41  ;;  %1985 = vrot.lane.b32.xlu1 %v3704_v8, %s2785_s3  ;;  %v1291_v47 = vmul.f32 %v3868_v4, %v1290_v18  ;;  %v3935_v18 = vpop.f32.mrf.mxu2 }
 0x25f   :  { %vm1574_vm13 = vcmp.eq.f32.partialorder %v3682_v9, 0.0  ;;  %2690 = vpow2.f32 %v839_v39  ;;  %v3918_v15 = vadd.f32 %v3700_v46, %v3747_v50  ;;  %v1282_v11 = vmul.f32 %v2679_v45, %v1281_v44  ;;  %v3929_v45 = vpop.permute.xlu1 %2091 }
 0x260   :  { %vm2185_vm14 = vcmask 130048   ;;  %vm1272_vm15 = vcmp.eq.f32.partialorder %v3532_v51, inf  ;;  %vm2218_vm0 = vcmask 261120   ;;  %2692 = vrsqrt.f32 %v3770_v35  ;;  %2105 = vrot.lane.b32.xlu2 %v3666_v36, %s2785_s3 }
 0x261   :  { %4816 = vst [vmem:[#allocation44_spill] sm:$0xff] %v3918_v15  ;;  %v999_v38 = vadd.f32 1.0, %v3908_v62  ;;  %v793_v23 = vsub.f32 0.0, %v761_v57  ;;  %v1273_v50 = vsel %vm1272_vm15, %v3532_v51, %v1271_v40  ;;  %vm2251_vm1 = vcmask 392192  }
 0x262   :  { %v1275_v41 = vand.u32 2147483648, %v3532_v51  ;;  %v1283_v39 = vmul.f32 %v1282_v11, %v3635_v37  ;;  %v1292_v13 = vmul.f32 0.5, %v1291_v47  ;;  %v2687_v14 = vpop.eup %2686  ;;  %vm1560_vm2 = vcmp.eq.f32.partialorder %v3639_v16, inf }
 0x263   :  { %vm1274_vm3 = vcmp.eq.f32.partialorder %v3532_v51, 0.0  ;;  %vm1284_vm4 = vcmp.eq.f32.partialorder %v3635_v37, inf  ;;  %v1287_v57 = vand.u32 2147483648, %v3635_v37  ;;  %v985_v21 = vadd.f32 1.0, %v984_v20 }
 0x264   :  { %v1802_v6 = vpop.permute.xlu2 %1801  ;;  %2107 = vrot.lane.b32.xlu0 %v3770_v35, %s2785_s3  ;;  %v2689_v44 = vpop.eup %2688  ;;  %v1285_v47 = vsel %vm1284_vm4, %v3635_v37, %v1283_v39  ;;  %v1573_v51 = vsel %vm1572_vm12, %v3682_v9, %v1571_v31  ;;  %v727_v48 = vmax.f32 %v3764_v53, 0.0  ;;  %vm1286_vm5 = vcmp.eq.f32.partialorder %v3635_v37, 0.0 }
 0x265   :  { %v1897_v63 = vadd.f32 %v1802_v6, %v3147_v27  ;;  %v1293_v6 = vsub.f32 1.5, %v1292_v13  ;;  %vm1562_vm6 = vcmp.eq.f32.partialorder %v3639_v16, 0.0  ;;  %v1288_v20 = vsel %vm1286_vm5, %v1287_v57, %v1285_v47 }
 0x266   :  { %1859 = vrot.lane.b32.xlu1 %v3893_v1, %s2786_s13  ;;  %vm3961_vm7 = vcmp.lt.f32.partialorder %v987_v33, 0.0004427343  ;;  %v762_v37 = vand.u32 2147483647, %v3918_v15  ;;  %v1559_v1 = vmul.f32 %v1558_v0, %v3639_v16  ;;  %2694 = vlog2.f32 %v999_v38  ;;  %v3986_v38 = vpop.permute.xlu0 %2137 }
 0x267   :  { %v2186_v27 = vsel %vm2185_vm14, %v1897_v63, %v3780_v10  ;;  %v1276_v10 = vsel %vm1274_vm3, %v1275_v41, %v1273_v50  ;;  %v3947_v63 = vpop.eup %2690  ;;  %v994_v50 = vadd.f32 1.0, %v993_v3  ;;  %v996_v41 = vand.u32 2147483647, %v3851_v7 }
 0x268   :  { %v2219_v40 = vsel %vm2218_vm0, %v2186_v27, %v3856_v28  ;;  %v3954_v28 = vpop.eup %2692  ;;  %v1294_v39 = vmul.f32 %v3868_v4, %v1293_v6  ;;  %v841_v27 = vmul.f32 1.442695, %v793_v23  ;;  %v1743_v13 = vmul.f32 %v3230_v25, %v1276_v10 }
 0x269   :  { %v2252_v11 = vsel %vm2251_vm1, %v2219_v40, 0.0  ;;  %v1576_v40 = vsel %vm1574_vm13, %v1575_v30, %v1573_v51  ;;  %v1002_v4 = vmul.f32 -0.5, %v3908_v62  ;;  %v983_v33 = vmul.f32 0.6931472, %v2687_v14  ;;  %v3993_v14 = vpop.permute.xlu1 %2015 }
 0x26a   :  { %2284 = vst [vmem:[#allocation2] sm:$0xff] %v2252_v11  ;;  %v986_v57 = vmul.f32 %v3838_v5, %v985_v21  ;;  %1813 = vrot.lane.b32.xlu2 %v1743_v13, %s2786_s13  ;;  %v1744_v23 = vmul.f32 %v3293_v34, %v1288_v20  ;;  %v1302_v25 = vmul.f32 %v3954_v28, %v3770_v35  ;;  %v992_v10 = vmul.f32 0.6931472, %v2689_v44 }
 0x26b   :  { %v995_v47 = vmul.f32 %v3851_v7, %v994_v50  ;;  %vm3981_vm8 = vcmp.lt.f32.partialorder %v996_v41, 0.0004427343  ;;  %v1295_v0 = vmul.f32 %v1294_v39, %v3666_v36  ;;  %v3989_v5 = vmul.f32 %v3720_v17, %v1576_v40  ;;  %v4003_v17 = vpop.f32.mrf.mxu2 }
 0x26c   :  { %v3967_v3 = vpop.permute.xlu2 %2141  ;;  %2696 = vpow2.f32 %v841_v27  ;;  %v794_v34 = vsub.f32 0.0, %v762_v37  ;;  %1815 = vrot.lane.b32.xlu0 %v1744_v23, %s2786_s13  ;;  %v1561_v7 = vsel %vm1560_vm2, %v3639_v16, %v1559_v1  ;;  %v1003_v44 = vadd.f32 1.0, %v1002_v4  ;;  %v2695_v41 = vpop.eup %2694 }
 0x26d   :  { %v1008_v11 = vadd.f32 1.0, %v3947_v63  ;;  %v4001_v6 = vadd.f32 %v3700_v46, %v3810_v59  ;;  %v989_v51 = vsel %vm3961_vm7, %v986_v57, %v983_v33  ;;  %vm1296_vm9 = vcmp.eq.f32.partialorder %v3666_v36, inf }
 0x26e   :  { %v1303_v50 = vmul.f32 %v3954_v28, %v1302_v25  ;;  %2698 = vrsqrt.f32 %v3900_v29  ;;  %v998_v20 = vsel %vm3981_vm8, %v995_v47, %v992_v10  ;;  %v1005_v39 = vand.u32 2147483647, %v3908_v62  ;;  %2109 = vrot.lane.b32.xlu1 %v3861_v60, %s2785_s3 }
 0x26f   :  { %v1297_v59 = vsel %vm1296_vm9, %v3666_v36, %v1295_v0  ;;  %2700 = vrsqrt.f32 %v3861_v60  ;;  %v4821_v31 = vand.u32 2147483648, %v3639_v16  ;;  %v843_v37 = vmul.f32 1.442695, %v794_v34 }
 0x270   :  { %v4023_v13 = vadd.f32 %v3700_v46, %v3877_v61  ;;  %v1299_v40 = vand.u32 2147483648, %v3666_v36  ;;  %v1004_v4 = vmul.f32 %v3908_v62, %v1003_v44  ;;  %2702 = vlog2.f32 %v1008_v11 }
 0x271   :  { %v1564_v27 = vsel %vm1562_vm6, %v4821_v31, %v1561_v7  ;;  %v763_v33 = vand.u32 2147483647, %v4001_v6  ;;  %vm1298_vm10 = vcmp.eq.f32.partialorder %v3666_v36, 0.0  ;;  %v1001_v23 = vmul.f32 0.6931472, %v2695_v41  ;;  %v4064_v31 = vpop.permute.xlu0 %1971 }
 0x272   :  { %v4031_v57 = vpop.eup %2696  ;;  %1987 = vrot.lane.b32.xlu2 %v3718_v52, %s2785_s3  ;;  %v1300_v25 = vsel %vm1298_vm10, %v1299_v40, %v1297_v59  ;;  %v4037_v61 = vadd.f32 %v3700_v46, %v3935_v18  ;;  %v1304_v10 = vmul.f32 0.5, %v1303_v50  ;;  %v4822_v47 = vmax.f32 %v3704_v8, 0.0 }
 0x273   :  { %vm4043_vm11 = vcmp.lt.f32.partialorder %v1005_v39, 0.0004427343  ;;  %v1011_v36 = vmul.f32 -0.5, %v3947_v63  ;;  %v1014_v0 = vand.u32 2147483647, %v3947_v63  ;;  %v4825_v7 = vmax.f32 %v3718_v52, 0.0 }
 0x274   :  { %v4026_v1 = vpop.permute.xlu2 %1975  ;;  %v4041_v62 = vadd.f32 %v989_v51, %v4822_v47  ;;  %v4049_v34 = vpop.eup %2698  ;;  %v1767_v18 = vmul.f32 %v3755_v24, %v1564_v27  ;;  %2704 = vpow2.f32 %v843_v37  ;;  %v764_v11 = vand.u32 2147483647, %v4023_v13  ;;  %1989 = vrot.lane.b32.xlu0 %v3764_v53, %s2785_s3 }
 0x275   :  { %v4053_v44 = vadd.f32 %v998_v20, %v4825_v7  ;;  %v4059_v51 = vpop.eup %2700  ;;  %v1017_v41 = vadd.f32 1.0, %v4031_v57  ;;  %v795_v39 = vsub.f32 0.0, %v763_v33  ;;  %v1745_v59 = vmul.f32 %v3260_v58, %v1300_v25  ;;  %v4069_v27 = vpop.permute.xlu1 %2139 }
 0x276   :  { %v1007_v24 = vsel %vm4043_vm11, %v1004_v4, %v1001_v23  ;;  %v765_v20 = vand.u32 2147483647, %v4037_v61  ;;  %v1305_v37 = vsub.f32 1.5, %v1304_v10  ;;  %v1326_v40 = vmul.f32 %v4049_v34, %v3900_v29  ;;  %v2703_v47 = vpop.eup %2702  ;;  %v688_v4 = vpop.f32.mrf.mxu2 }
 0x277   :  { %v1012_v7 = vadd.f32 1.0, %v1011_v36  ;;  %vm4073_vm12 = vcmp.lt.f32.partialorder %v1014_v0, 0.0004427343  ;;  %v1020_v58 = vmul.f32 -0.5, %v4031_v57  ;;  %1817 = vrot.lane.b32.xlu1 %v1745_v59, %s2786_s13  ;;  %v796_v23 = vsub.f32 0.0, %v764_v11 }
 0x278   :  { %v1327_v10 = vmul.f32 %v4049_v34, %v1326_v40  ;;  %v1314_v30 = vmul.f32 %v4059_v51, %v3861_v60  ;;  %2706 = vrsqrt.f32 %v4041_v62  ;;  %v4086_v36 = vadd.f32 %v1007_v24, %v727_v48 }
 0x279   :  { %2708 = vlog2.f32 %v1017_v41  ;;  %v845_v0 = vmul.f32 1.442695, %v795_v39  ;;  %v797_v11 = vsub.f32 0.0, %v765_v20  ;;  %v1306_v59 = vmul.f32 %v3954_v28, %v1305_v37 }
 0x27a   :  { %v4089_v21 = vpop.eup %2704  ;;  %1861 = vrot.lane.b32.xlu2 %v1767_v18, %s2786_s13  ;;  %v1328_v40 = vmul.f32 0.5, %v1327_v10  ;;  %v1315_v52 = vmul.f32 %v4059_v51, %v1314_v30  ;;  %v4094_v22 = vmul.f32 0.6931472, %v2703_v47  ;;  %v1021_v32 = vadd.f32 1.0, %v1020_v58 }
 0x27b   :  { %v1023_v48 = vand.u32 2147483647, %v4031_v57  ;;  %v847_v39 = vmul.f32 1.442695, %v796_v23  ;;  %v4104_v24 = vmul.f32 %v3947_v63, %v1012_v7  ;;  %v1026_v20 = vadd.f32 1.0, %v4089_v21  ;;  %v4123_v7 = vpop.permute.xlu0 %2095 }
 0x27c   :  { %v1850_v25 = vpop.permute.xlu2 %1849  ;;  %1863 = vrot.lane.b32.xlu0 %v3989_v5, %s2786_s13  ;;  %v1329_v18 = vsub.f32 1.5, %v1328_v40  ;;  %v1316_v28 = vmul.f32 0.5, %v1315_v52  ;;  %v1029_v37 = vmul.f32 -0.5, %v4089_v21  ;;  %2710 = vrsqrt.f32 %v4086_v36 }
 0x27d   :  { %v1921_v33 = vadd.f32 %v1850_v25, %v3161_v43  ;;  %2712 = vpow2.f32 %v845_v0  ;;  %v1307_v5 = vmul.f32 %v1306_v59, %v3770_v35  ;;  %vm4117_vm13 = vcmp.lt.f32.partialorder %v1023_v48, 0.0004427343  ;;  %v4133_v0 = vpop.permute.xlu1 %1973 }
 0x27e   :  { %v4109_v47 = vpop.eup %2706  ;;  %v1317_v23 = vsub.f32 1.5, %v1316_v28  ;;  %v4127_v25 = vmul.f32 %v4031_v57, %v1021_v32  ;;  %v1032_v10 = vand.u32 2147483647, %v4089_v21  ;;  %2714 = vpow2.f32 %v847_v39  ;;  %v690_v59 = vpop.f32.mrf.mxu2 }
 0x27f   :  { %v2210_v41 = vsel %vm2185_vm14, %v1921_v33, %v3825_v2  ;;  %v849_v2 = vmul.f32 1.442695, %v797_v11  ;;  %1991 = vrot.lane.b32.xlu1 %v3816_v19, %s2785_s3  ;;  %v1330_v33 = vmul.f32 %v4049_v34, %v1329_v18  ;;  %v4131_v30 = vadd.f32 %v3700_v46, %v688_v4 }
 0x280   :  { %v2243_v43 = vsel %vm2218_vm0, %v2210_v41, %v3986_v38  ;;  %v2709_v38 = vpop.eup %2708  ;;  %2716 = vlog2.f32 %v1026_v20  ;;  %vm1308_vm15 = vcmp.eq.f32.partialorder %v3770_v35, inf  ;;  %v1318_v11 = vmul.f32 %v4059_v51, %v1317_v23 }
 0x281   :  { %v2276_v58 = vsel %vm2251_vm1, %v2243_v43, 0.0  ;;  %v1338_v34 = vmul.f32 %v4109_v47, %v4041_v62  ;;  %v1019_v40 = vmul.f32 0.6931472, %v2709_v38  ;;  %v1030_v32 = vadd.f32 1.0, %v1029_v37 }
 0x282   :  { %2308 = vst [vmem:[#allocation2 + $0xc0] sm:$0xff] %v2276_v58  ;;  %2718 = vpow2.f32 %v849_v2  ;;  %2111 = vrot.lane.b32.xlu2 %v3900_v29, %s2785_s3  ;;  %v1309_v57 = vsel %vm1308_vm15, %v3770_v35, %v1307_v5  ;;  %v4142_v4 = vpop.eup %2710  ;;  %v1311_v48 = vand.u32 2147483648, %v3770_v35  ;;  %v1331_v41 = vmul.f32 %v1330_v33, %v3900_v29 }
 0x283   :  { %v1319_v51 = vmul.f32 %v1318_v11, %v3861_v60  ;;  %2720 = vrsqrt.f32 %v4053_v44  ;;  %v4148_v39 = vpop.eup %2712  ;;  %vm1310_vm2 = vcmp.eq.f32.partialorder %v3770_v35, 0.0  ;;  %v767_v43 = vand.u32 2147483647, %v4131_v30 }
 0x284   :  { %2113 = vrot.lane.b32.xlu0 %v4041_v62, %s2785_s3  ;;  %vm1320_vm3 = vcmp.eq.f32.partialorder %v3861_v60, inf  ;;  %v4156_v18 = vadd.f32 %v3700_v46, %v690_v59  ;;  %v1312_v28 = vsel %vm1310_vm2, %v1311_v48, %v1309_v57  ;;  %v1323_v37 = vand.u32 2147483648, %v3861_v60  ;;  %v4161_v5 = vpop.eup %2714 }
 0x285   :  { %v1321_v20 = vsel %vm1320_vm3, %v3861_v60, %v1319_v51  ;;  %v1339_v2 = vmul.f32 %v4109_v47, %v1338_v34  ;;  %vm4163_vm4 = vcmp.lt.f32.partialorder %v1032_v10, 0.0004427343  ;;  %vm1332_vm5 = vcmp.eq.f32.partialorder %v3900_v29, inf }
 0x286   :  { %vm1322_vm6 = vcmp.eq.f32.partialorder %v3861_v60, 0.0  ;;  %v1362_v35 = vmul.f32 %v4142_v4, %v4086_v36  ;;  %v2717_v38 = vpop.eup %2716  ;;  %v1035_v33 = vadd.f32 1.0, %v4148_v39  ;;  %v4174_v23 = vadd.f32 %v3700_v46, %v4003_v17 }
 0x287   :  { %2115 = vrot.lane.b32.xlu1 %v4053_v44, %s2785_s3  ;;  %v1333_v10 = vsel %vm1332_vm5, %v3900_v29, %v1331_v41  ;;  %v1324_v11 = vsel %vm1322_vm6, %v1323_v37, %v1321_v20  ;;  %v1746_v60 = vmul.f32 %v3256_v55, %v1312_v28  ;;  %v799_v34 = vsub.f32 0.0, %v767_v43  ;;  %v4189_v41 = vpop.permute.xlu0 %2019  ;;  %v4193_v28 = vpop.permute.xlu1 %2097 }
 0x288   :  { %v4179_v59 = vpop.eup %2718  ;;  %v1335_v57 = vand.u32 2147483648, %v3900_v29  ;;  %v768_v48 = vand.u32 2147483647, %v4156_v18  ;;  %v1025_v46 = vsel %vm4117_vm13, %v4127_v25, %v1019_v40  ;;  %v1044_v17 = vadd.f32 1.0, %v4161_v5  ;;  %4832 = vst [vmem:[#allocation45_spill] sm:$0xff] %v4189_v41 }
 0x289   :  { %v2721_v51 = vpop.eup %2720  ;;  %vm1334_vm7 = vcmp.eq.f32.partialorder %v3900_v29, 0.0  ;;  %v1340_v20 = vmul.f32 0.5, %v1339_v2  ;;  %v1747_v43 = vmul.f32 %v3321_v12, %v1324_v11  ;;  %v1363_v37 = vmul.f32 %v4142_v4, %v1362_v35 }
 0x28a   :  { %1819 = vrot.lane.b32.xlu2 %v1746_v60, %s2786_s13  ;;  %v1336_v55 = vsel %vm1334_vm7, %v1335_v57, %v1333_v10  ;;  %v1350_v52 = vmul.f32 %v2721_v51, %v4053_v44  ;;  %v4833_v63 = vmax.f32 %v3816_v19, 0.0  ;;  %v4834_v29 = vsel %vm4073_vm12, %v4104_v24, %v4094_v22  ;;  %v4836_v24 = vld [vmem:[#allocation16_spill] sm:$0xff] }
 0x28b   :  { %v1028_v40 = vmul.f32 0.6931472, %v2717_v38  ;;  %v1053_v2 = vadd.f32 1.0, %v4179_v59  ;;  %v766_v12 = vand.u32 2147483647, %v4174_v23  ;;  %2722 = vlog2.f32 %v1035_v33 }
 0x28c   :  { %v4204_v25 = vadd.f32 %v4834_v29, %v4833_v63  ;;  %v853_v10 = vmul.f32 1.442695, %v799_v34  ;;  %1821 = vrot.lane.b32.xlu0 %v1747_v43, %s2786_s13  ;;  %v800_v35 = vsub.f32 0.0, %v768_v48  ;;  %v1351_v11 = vmul.f32 %v2721_v51, %v1350_v52 }
 0x28d   :  { %v4835_v60 = vmax.f32 %v3884_v42, 0.0  ;;  %v1031_v50 = vmul.f32 %v4089_v21, %v1030_v32  ;;  %v1038_v22 = vmul.f32 -0.5, %v4148_v39  ;;  %v1748_v38 = vmul.f32 %v4836_v24, %v1336_v55  ;;  %v4221_v32 = vpop.permute.xlu2 %2099 }
 0x28e   :  { %2724 = vlog2.f32 %v1044_v17  ;;  %v1341_v63 = vsub.f32 1.5, %v1340_v20  ;;  %v1364_v29 = vmul.f32 0.5, %v1363_v37  ;;  %v1352_v41 = vmul.f32 0.5, %v1351_v11 }
 0x28f   :  { %v4211_v57 = vadd.f32 %v1025_v46, %v4835_v60  ;;  %v1034_v33 = vsel %vm4163_vm4, %v1031_v50, %v1028_v40  ;;  %v1041_v34 = vand.u32 2147483647, %v4148_v39  ;;  %2726 = vlog2.f32 %v1053_v2  ;;  %1823 = vrot.lane.b32.xlu1 %v1748_v38, %s2786_s13  ;;  %v4240_v60 = vpop.permute.xlu1 %2021 }
 0x290   :  { %v798_v52 = vsub.f32 0.0, %v766_v12  ;;  %v1056_v48 = vmul.f32 -0.5, %v4179_v59  ;;  %2728 = vpow2.f32 %v853_v10  ;;  %v855_v21 = vmul.f32 1.442695, %v800_v35  ;;  %4840 = vst [vmem:[#allocation16_spill] sm:$0xff] %v4240_v60 }
 0x291   :  { %v1353_v46 = vsub.f32 1.5, %v1352_v41  ;;  %v1039_v17 = vadd.f32 1.0, %v1038_v22  ;;  %v1047_v20 = vmul.f32 -0.5, %v4161_v5  ;;  %2730 = vrsqrt.f32 %v4204_v25  ;;  %v2723_v58 = vpop.eup %2722  ;;  %v1804_v10 = vpop.permute.xlu0 %1803 }
 0x292   :  { %v4837_v55 = vmax.f32 %v3918_v15, 0.0  ;;  %1993 = vrot.lane.b32.xlu2 %v3884_v42, %s2785_s3  ;;  %v1342_v37 = vmul.f32 %v4109_v47, %v1341_v63  ;;  %v1365_v40 = vsub.f32 1.5, %v1364_v29  ;;  %2732 = vrsqrt.f32 %v4211_v57  ;;  %v4841_v47 = vld [vmem:[#allocation5_spill] sm:$0xff]  ;;  %v4850_v42 = vld [vmem:[#allocation42_spill] sm:$0xff] }
 0x293   :  { %vm4233_vm8 = vcmp.lt.f32.partialorder %v1041_v34, 0.0004427343  ;;  %v1050_v2 = vand.u32 2147483647, %v4161_v5  ;;  %v851_v12 = vmul.f32 1.442695, %v798_v52  ;;  %2734 = vpow2.f32 %v855_v21 }
 0x294   :  { %v4227_v43 = vadd.f32 %v1034_v33, %v4837_v55  ;;  %v2725_v35 = vpop.eup %2724  ;;  %v1057_v11 = vadd.f32 1.0, %v1056_v48  ;;  %1995 = vrot.lane.b32.xlu0 %v3918_v15, %s2785_s3  ;;  %v1898_v50 = vadd.f32 %v1804_v10, %v4841_v47  ;;  %v1354_v22 = vmul.f32 %v2721_v51, %v1353_v46  ;;  %v4842_v52 = vld [vmem:[#allocation36_spill] sm:$0xff] }
 0x295   :  { %v2727_v24 = vpop.eup %2726  ;;  %v4243_v38 = vmul.f32 0.6931472, %v2723_v58  ;;  %v4246_v63 = vmul.f32 %v4148_v39, %v1039_v17  ;;  %v1048_v29 = vadd.f32 1.0, %v1047_v20  ;;  %v1059_v33 = vand.u32 2147483647, %v4179_v59 }
 0x296   :  { %v4249_v34 = vpop.eup %2728  ;;  %v2187_v48 = vsel %vm2185_vm14, %v1898_v50, %v4842_v52  ;;  %v1343_v21 = vmul.f32 %v1342_v37, %v4041_v62  ;;  %v1366_v55 = vmul.f32 %v4142_v4, %v1365_v40  ;;  %2736 = vrsqrt.f32 %v4227_v43 }
 0x297   :  { %v4256_v51 = vpop.eup %2730  ;;  %v733_v39 = vmax.f32 %v4037_v61, 0.0  ;;  %2738 = vpow2.f32 %v851_v12  ;;  %1997 = vrot.lane.b32.xlu1 %v4001_v6, %s2785_s3  ;;  %v2220_v17 = vsel %vm2218_vm0, %v2187_v48, %v3929_v45  ;;  %v1055_v58 = vmul.f32 0.6931472, %v2727_v24 }
 0x298   :  { %v4264_v20 = vpop.eup %2732  ;;  %v1058_v4 = vmul.f32 %v4179_v59, %v1057_v11  ;;  %v2253_v37 = vsel %vm2251_vm1, %v2220_v17, 0.0  ;;  %v1355_v40 = vmul.f32 %v1354_v22, %v4053_v44  ;;  %v4274_v10 = vmul.f32 %v4161_v5, %v1048_v29  ;;  %v4290_v5 = vpop.permute.xlu2 %2023 }
 0x299   :  { %vm4276_vm9 = vcmp.lt.f32.partialorder %v1059_v33, 0.0004427343  ;;  %2285 = vst [vmem:[#allocation2 + $0x8] sm:$0xff] %v2253_v37  ;;  %vm1344_vm10 = vcmp.eq.f32.partialorder %v4041_v62, inf  ;;  %v4281_v45 = vpop.eup %2734  ;;  %vm4283_vm11 = vcmp.lt.f32.partialorder %v1050_v2, 0.0004427343  ;;  %v1367_v22 = vmul.f32 %v1366_v55, %v4086_v36  ;;  %v4297_v33 = vpop.permute.xlu0 %2143 }
 0x29a   :  { %v1071_v11 = vadd.f32 1.0, %v4249_v34  ;;  %2117 = vrot.lane.b32.xlu2 %v4086_v36, %s2785_s3  ;;  %4847 = vst [vmem:[#allocation5_spill] sm:$0xff] %v4290_v5  ;;  %v1345_v50 = vsel %vm1344_vm10, %v4041_v62, %v1343_v21  ;;  %v1374_v24 = vmul.f32 %v4256_v51, %v4204_v25  ;;  %v1046_v29 = vmul.f32 0.6931472, %v2725_v35 }
 0x29b   :  { %v1347_v2 = vand.u32 2147483648, %v4041_v62  ;;  %vm1356_vm12 = vcmp.eq.f32.partialorder %v4053_v44, inf  ;;  %v1386_v52 = vmul.f32 %v4264_v20, %v4211_v57  ;;  %v1061_v21 = vsel %vm4276_vm9, %v1058_v4, %v1055_v58 }
 0x29c   :  { %v4302_v48 = vpop.eup %2736  ;;  %2119 = vrot.lane.b32.xlu0 %v4204_v25, %s2785_s3  ;;  %vm1346_vm13 = vcmp.eq.f32.partialorder %v4041_v62, 0.0  ;;  %vm1368_vm15 = vcmp.eq.f32.partialorder %v4086_v36, inf  ;;  %v1357_v35 = vsel %vm1356_vm12, %v4053_v44, %v1355_v40  ;;  %v1074_v17 = vmul.f32 -0.5, %v4249_v34  ;;  %v4848_v40 = vld [vmem:[#allocation6_spill] sm:$0xff] }
 0x29d   :  { %v4311_v55 = vpop.eup %2738  ;;  %v1080_v37 = vadd.f32 1.0, %v4281_v45  ;;  %v1348_v12 = vsel %vm1346_vm13, %v1347_v2, %v1345_v50  ;;  %v1359_v46 = vand.u32 2147483648, %v4053_v44  ;;  %2740 = vlog2.f32 %v1071_v11  ;;  %v4849_v2 = vld [vmem:[#allocation15_spill] sm:$0xff] }
 0x29e   :  { %v1369_v4 = vsel %vm1368_vm15, %v4086_v36, %v1367_v22  ;;  %vm1358_vm2 = vcmp.eq.f32.partialorder %v4053_v44, 0.0  ;;  %v1375_v62 = vmul.f32 %v4256_v51, %v1374_v24  ;;  %v1398_v5 = vmul.f32 %v4302_v48, %v4227_v43 }
 0x29f   :  { %2121 = vrot.lane.b32.xlu1 %v4211_v57, %s2785_s3  ;;  %v1360_v60 = vsel %vm1358_vm2, %v1359_v46, %v1357_v35  ;;  %v1387_v50 = vmul.f32 %v4264_v20, %v1386_v52  ;;  %v1062_v11 = vadd.f32 1.0, %v4311_v55  ;;  %v1749_v15 = vmul.f32 %v4849_v2, %v1348_v12  ;;  %v4851_v35 = vld [vmem:[#allocation41_spill] sm:$0xff] }
 0x2a0   :  { %v1806_v58 = vpop.permute.xlu1 %1805  ;;  %vm1370_vm3 = vcmp.eq.f32.partialorder %v4086_v36, 0.0  ;;  %v1371_v44 = vand.u32 2147483648, %v4086_v36  ;;  %v4329_v22 = vadd.f32 %v1061_v21, %v733_v39  ;;  %v1075_v24 = vadd.f32 1.0, %v1074_v17 }
 0x2a1   :  { %v1899_v47 = vadd.f32 %v1806_v58, %v4848_v40  ;;  %2742 = vlog2.f32 %v1080_v37  ;;  %v4852_v40 = vld [vmem:[#allocation24_spill] sm:$0xff]  ;;  %v1376_v12 = vmul.f32 0.5, %v1375_v62  ;;  %v1052_v36 = vsel %vm4283_vm11, %v4274_v10, %v1046_v29  ;;  %v4341_v21 = vpop.permute.xlu0 %1977 }
 0x2a2   :  { %1825 = vrot.lane.b32.xlu2 %v1749_v15, %s2786_s13  ;;  %v1372_v58 = vsel %vm1370_vm3, %v1371_v44, %v1369_v4  ;;  %v1750_v53 = vmul.f32 %v4852_v40, %v1360_v60  ;;  %v1399_v17 = vmul.f32 %v4302_v48, %v1398_v5  ;;  %v732_v15 = vmax.f32 %v4023_v13, 0.0  ;;  %v1808_v62 = vpop.permute.xlu2 %1807 }
 0x2a3   :  { %v2188_v46 = vsel %vm2185_vm14, %v1899_v47, %v4850_v42  ;;  %v1388_v42 = vmul.f32 0.5, %v1387_v50  ;;  %v2741_v37 = vpop.eup %2740  ;;  %2744 = vlog2.f32 %v1062_v11  ;;  %v1077_v4 = vand.u32 2147483647, %v4249_v34  ;;  %v4855_v47 = vld [vmem:[#allocation8_spill] sm:$0xff]  ;;  %v4856_v11 = vld [vmem:[#allocation19_spill] sm:$0xff] }
 0x2a4   :  { %v2221_v52 = vsel %vm2218_vm0, %v2188_v46, %v4851_v35  ;;  %v1083_v60 = vmul.f32 -0.5, %v4281_v45  ;;  %1827 = vrot.lane.b32.xlu0 %v1750_v53, %s2786_s13  ;;  %v4853_v10 = vmax.f32 %v4001_v6, 0.0  ;;  %v4854_v59 = vsel %vm4233_vm8, %v4246_v63, %v4243_v38 }
 0x2a5   :  { %v2254_v39 = vsel %vm2251_vm1, %v2221_v52, 0.0  ;;  %v1065_v29 = vmul.f32 -0.5, %v4311_v55  ;;  %v1900_v50 = vadd.f32 %v1808_v62, %v4855_v47  ;;  %v1751_v2 = vmul.f32 %v4856_v11, %v1372_v58 }
 0x2a6   :  { %2286 = vst [vmem:[#allocation2 + $0x10] sm:$0xff] %v2254_v39  ;;  %v4355_v5 = vadd.f32 %v4854_v59, %v4853_v10  ;;  %v4360_v44 = vadd.f32 %v1052_v36, %v732_v15  ;;  %v1076_v46 = vmul.f32 %v4249_v34, %v1075_v24  ;;  %v1377_v35 = vsub.f32 1.5, %v1376_v12 }
 0x2a7   :  { %2746 = vrsqrt.f32 %v4329_v22  ;;  %v2743_v41 = vpop.eup %2742  ;;  %v1073_v52 = vmul.f32 0.6931472, %v2741_v37  ;;  %v2189_v38 = vsel %vm2185_vm14, %v1900_v50, %v3886_v54  ;;  %1829 = vrot.lane.b32.xlu1 %v1751_v2, %s2786_s13  ;;  %v1400_v63 = vmul.f32 0.5, %v1399_v17 }
 0x2a8   :  { %v4363_v53 = vpop.permute.xlu1 %2145  ;;  %v1389_v40 = vsub.f32 1.5, %v1388_v42  ;;  %vm4369_vm4 = vcmp.lt.f32.partialorder %v1077_v4, 0.0004427343  ;;  %v1084_v36 = vadd.f32 1.0, %v1083_v60  ;;  %v2222_v34 = vsel %vm2218_vm0, %v2189_v38, %v4123_v7 }
 0x2a9   :  { %v1066_v24 = vadd.f32 1.0, %v1065_v29  ;;  %v1086_v12 = vand.u32 2147483647, %v4281_v45  ;;  %v2255_v39 = vsel %vm2251_vm1, %v2222_v34, 0.0  ;;  %2748 = vrsqrt.f32 %v4355_v5  ;;  %v2745_v54 = vpop.eup %2744  ;;  %v1852_v15 = vpop.permute.xlu0 %1851 }
 0x2aa   :  { %v1082_v37 = vmul.f32 0.6931472, %v2743_v41  ;;  %2287 = vst [vmem:[#allocation2 + $0x18] sm:$0xff] %v2255_v39  ;;  %1999 = vrot.lane.b32.xlu2 %v4023_v13, %s2785_s3  ;;  %v1378_v17 = vmul.f32 %v4256_v51, %v1377_v35  ;;  %v1079_v42 = vsel %vm4369_vm4, %v1076_v46, %v1073_v52  ;;  %v1401_v7 = vsub.f32 1.5, %v1400_v63  ;;  %v4390_v29 = vpop.permute.xlu2 %1981  ;;  %v4859_v51 = vld [vmem:[#allocation7_spill] sm:$0xff]  ;;  %v4862_v41 = vld [vmem:[#allocation37_spill] sm:$0xff] }
 0x2ab   :  { %v1390_v4 = vmul.f32 %v4264_v20, %v1389_v40  ;;  %2750 = vrsqrt.f32 %v4360_v44  ;;  %v1068_v62 = vand.u32 2147483647, %v4311_v55  ;;  %v735_v10 = vmax.f32 %v4131_v30, 0.0 }
 0x2ac   :  { %v1085_v59 = vmul.f32 %v4281_v45, %v1084_v36  ;;  %2001 = vrot.lane.b32.xlu0 %v4037_v61, %s2785_s3  ;;  %v1922_v47 = vadd.f32 %v1852_v15, %v4859_v51  ;;  %v1064_v50 = vmul.f32 0.6931472, %v2745_v54  ;;  %v1067_v20 = vmul.f32 %v4311_v55, %v1066_v24 }
 0x2ad   :  { %v4385_v60 = vpop.eup %2746  ;;  %v736_v11 = vmax.f32 %v4156_v18, 0.0  ;;  %vm4397_vm5 = vcmp.lt.f32.partialorder %v1086_v12, 0.0004427343  ;;  %v4401_v46 = vadd.f32 %v1079_v42, %v735_v10  ;;  %v1379_v38 = vmul.f32 %v1378_v17, %v4204_v25 }
 0x2ae   :  { %v1088_v45 = vsel %vm4397_vm5, %v1085_v59, %v1082_v37  ;;  %v2211_v52 = vsel %vm2185_vm14, %v1922_v47, %v4862_v41  ;;  %v1402_v40 = vmul.f32 %v4302_v48, %v1401_v7  ;;  %v1391_v58 = vmul.f32 %v1390_v4, %v4211_v57  ;;  %v4865_v47 = vld [vmem:[#allocation11_spill] sm:$0xff]  ;;  %v4866_v41 = vld [vmem:[#allocation10_spill] sm:$0xff] }
 0x2af   :  { %v4410_v63 = vpop.eup %2748  ;;  %2003 = vrot.lane.b32.xlu1 %v4174_v23, %s2785_s3  ;;  %v2244_v55 = vsel %vm2218_vm0, %v2211_v52, %v4069_v27  ;;  %v1434_v36 = vmul.f32 %v4385_v60, %v4329_v22  ;;  %vm4420_vm6 = vcmp.lt.f32.partialorder %v1068_v62, 0.0004427343  ;;  %v734_v39 = vmax.f32 %v4174_v23, 0.0 }
 0x2b0   :  { %v4405_v35 = vpop.permute.xlu1 %1979  ;;  %v2277_v24 = vsel %vm2251_vm1, %v2244_v55, 0.0  ;;  %v1070_v27 = vsel %vm4420_vm6, %v1067_v20, %v1064_v50  ;;  %v4430_v54 = vadd.f32 %v1088_v45, %v736_v11  ;;  %vm1380_vm7 = vcmp.eq.f32.partialorder %v4204_v25, inf }
 0x2b1   :  { %v4425_v12 = vpop.eup %2750  ;;  %2309 = vst [vmem:[#allocation2 + $0xc8] sm:$0xff] %v2277_v24  ;;  %v1381_v48 = vsel %vm1380_vm7, %v4204_v25, %v1379_v38  ;;  %v1383_v37 = vand.u32 2147483648, %v4204_v25  ;;  %vm1392_vm8 = vcmp.eq.f32.partialorder %v4211_v57, inf  ;;  %v1410_v17 = vmul.f32 %v4410_v63, %v4355_v5  ;;  %v4449_v10 = vpop.permute.xlu0 %2101 }
 0x2b2   :  { %2123 = vrot.lane.b32.xlu2 %v4227_v43, %s2785_s3  ;;  %v1403_v42 = vmul.f32 %v1402_v40, %v4227_v43  ;;  %v1393_v15 = vsel %vm1392_vm8, %v4211_v57, %v1391_v58  ;;  %v1435_v7 = vmul.f32 %v4385_v60, %v1434_v36  ;;  %2752 = vrsqrt.f32 %v4401_v46  ;;  %v1856_v62 = vpop.permute.xlu2 %1855  ;;  %v4867_v40 = vld [vmem:[#allocation18_spill] sm:$0xff] }
 0x2b3   :  { %v4444_v4 = vadd.f32 %v1070_v27, %v734_v39  ;;  %vm1382_vm9 = vcmp.eq.f32.partialorder %v4204_v25, 0.0  ;;  %v1395_v59 = vand.u32 2147483648, %v4211_v57  ;;  %v1422_v51 = vmul.f32 %v4425_v12, %v4360_v44 }
 0x2b4   :  { %2125 = vrot.lane.b32.xlu0 %v4355_v5, %s2785_s3  ;;  %v1924_v50 = vadd.f32 %v1856_v62, %v4865_v47  ;;  %v1384_v20 = vsel %vm1382_vm9, %v1383_v37, %v1381_v48  ;;  %vm1394_vm10 = vcmp.eq.f32.partialorder %v4211_v57, 0.0  ;;  %2754 = vrsqrt.f32 %v4430_v54  ;;  %v4868_v48 = vld [vmem:[#allocation29_spill] sm:$0xff] }
 0x2b5   :  { %vm1404_vm11 = vcmp.eq.f32.partialorder %v4227_v43, inf  ;;  %v1396_v2 = vsel %vm1394_vm10, %v1395_v59, %v1393_v15  ;;  %v1411_v25 = vmul.f32 %v4410_v63, %v1410_v17  ;;  %v1436_v55 = vmul.f32 0.5, %v1435_v7 }
 0x2b6   :  { %v2213_v45 = vsel %vm2185_vm14, %v1924_v50, %v3993_v14  ;;  %v1405_v38 = vsel %vm1404_vm11, %v4227_v43, %v1403_v42  ;;  %v1752_v58 = vmul.f32 %v4867_v40, %v1384_v20  ;;  %v1407_v36 = vand.u32 2147483648, %v4227_v43 }
 0x2b7   :  { %2127 = vrot.lane.b32.xlu1 %v4360_v44, %s2785_s3  ;;  %v2246_v57 = vsel %vm2218_vm0, %v2213_v45, %v4297_v33  ;;  %v1423_v34 = vmul.f32 %v4425_v12, %v1422_v51  ;;  %vm1406_vm12 = vcmp.eq.f32.partialorder %v4227_v43, 0.0  ;;  %2756 = vrsqrt.f32 %v4444_v4 }
 0x2b8   :  { %v1854_v11 = vpop.permute.xlu1 %1853  ;;  %v4470_v24 = vpop.eup %2752  ;;  %v2279_v14 = vsel %vm2251_vm1, %v2246_v57, 0.0  ;;  %v1408_v27 = vsel %vm1406_vm12, %v1407_v36, %v1405_v38  ;;  %v1753_v37 = vmul.f32 %v4868_v48, %v1396_v2  ;;  %v1412_v17 = vmul.f32 0.5, %v1411_v25  ;;  %v4870_v25 = vld [vmem:[#allocation9_spill] sm:$0xff]  ;;  %v4871_v57 = vld [vmem:[#allocation39_spill] sm:$0xff] }
 0x2b9   :  { %v1923_v52 = vadd.f32 %v1854_v11, %v4866_v41  ;;  %2311 = vst [vmem:[#allocation2 + $0xd8] sm:$0xff] %v2279_v14  ;;  %v1437_v7 = vsub.f32 1.5, %v1436_v55  ;;  %v1424_v62 = vmul.f32 0.5, %v1423_v34  ;;  %v1458_v59 = vmul.f32 %v4470_v24, %v4401_v46 }
 0x2ba   :  { %1831 = vrot.lane.b32.xlu2 %v1752_v58, %s2786_s13  ;;  %v2755_v42 = vpop.eup %2754  ;;  %v1413_v50 = vsub.f32 1.5, %v1412_v17  ;;  %vm1440_vm13 = vcmp.eq.f32.partialorder %v4329_v22, inf  ;;  %vm1442_vm15 = vcmp.eq.f32.partialorder %v4329_v22, 0.0  ;;  %vm1416_vm2 = vcmp.eq.f32.partialorder %v4355_v5, inf }
 0x2bb   :  { %v2212_v39 = vsel %vm2185_vm14, %v1923_v52, %v3921_v26  ;;  %v4482_v26 = vpop.permute.xlu2 %2105  ;;  %v1470_v43 = vmul.f32 %v2755_v42, %v4430_v54  ;;  %v1438_v41 = vmul.f32 %v4385_v60, %v1437_v7  ;;  %v1425_v38 = vsub.f32 1.5, %v1424_v62 }
 0x2bc   :  { %v2245_v33 = vsel %vm2218_vm0, %v2212_v39, %v3967_v3  ;;  %1833 = vrot.lane.b32.xlu0 %v1753_v37, %s2786_s13  ;;  %v4869_v3 = vld [vmem:[#allocation22_spill] sm:$0xff]  ;;  %v1459_v55 = vmul.f32 %v4470_v24, %v1458_v59  ;;  %v1414_v36 = vmul.f32 %v4410_v63, %v1413_v50  ;;  %v1443_v59 = vand.u32 2147483648, %v4329_v22 }
 0x2bd   :  { %v2278_v15 = vsel %vm2251_vm1, %v2245_v33, 0.0  ;;  %v1754_v51 = vmul.f32 %v4869_v3, %v1408_v27  ;;  %v1471_v20 = vmul.f32 %v2755_v42, %v1470_v43  ;;  %v4489_v11 = vpop.eup %2756  ;;  %v1439_v14 = vmul.f32 %v1438_v41, %v4329_v22  ;;  %v4872_v37 = vld [vmem:[#allocation14_spill] sm:$0xff] }
 0x2be   :  { %2310 = vst [vmem:[#allocation2 + $0xd0] sm:$0xff] %v2278_v15  ;;  %v1810_v47 = vpop.permute.xlu0 %1809  ;;  %v1446_v34 = vmul.f32 %v4489_v11, %v4444_v4  ;;  %v1426_v27 = vmul.f32 %v4425_v12, %v1425_v38  ;;  %v1460_v48 = vmul.f32 0.5, %v1459_v55  ;;  %v1415_v63 = vmul.f32 %v1414_v36, %v4355_v5 }
 0x2bf   :  { %1835 = vrot.lane.b32.xlu1 %v1754_v51, %s2786_s13  ;;  %v1901_v45 = vadd.f32 %v1810_v47, %v4870_v25  ;;  %v1472_v52 = vmul.f32 0.5, %v1471_v20  ;;  %v1441_v43 = vsel %vm1440_vm13, %v4329_v22, %v1439_v14  ;;  %vm1428_vm3 = vcmp.eq.f32.partialorder %v4360_v44, inf }
 0x2c0   :  { %v4492_v2 = vpop.permute.xlu1 %2103  ;;  %v1447_v15 = vmul.f32 %v4489_v11, %v1446_v34  ;;  %v1427_v3 = vmul.f32 %v1426_v27, %v4360_v44  ;;  %v1461_v51 = vsub.f32 1.5, %v1460_v48  ;;  %v1444_v20 = vsel %vm1442_vm15, %v1443_v59, %v1441_v43 }
 0x2c1   :  { %v2190_v40 = vsel %vm2185_vm14, %v1901_v45, %v4871_v57  ;;  %v1473_v39 = vsub.f32 1.5, %v1472_v52  ;;  %v1419_v45 = vand.u32 2147483648, %v4355_v5  ;;  %vm1418_vm4 = vcmp.eq.f32.partialorder %v4355_v5, 0.0 }
 0x2c2   :  { %2005 = vrot.lane.b32.xlu2 %v4131_v30, %s2785_s3  ;;  %v2223_v58 = vsel %vm2218_vm0, %v2190_v40, %v4193_v28  ;;  %v1448_v25 = vmul.f32 0.5, %v1447_v15  ;;  %v1462_v55 = vmul.f32 %v4470_v24, %v1461_v51  ;;  %v4874_v40 = vld [vmem:[#allocation28_spill] sm:$0xff]  ;;  %v1431_v34 = vand.u32 2147483648, %v4360_v44 }
 0x2c3   :  { %v2256_v60 = vsel %vm2251_vm1, %v2223_v58, 0.0  ;;  %v1474_v12 = vmul.f32 %v2755_v42, %v1473_v39  ;;  %v1757_v58 = vmul.f32 %v4874_v40, %v1444_v20  ;;  %vm1476_vm5 = vcmp.eq.f32.partialorder %v4430_v54, inf  ;;  %v4875_v24 = vld [vmem:[#allocation12_spill] sm:$0xff] }
 0x2c4   :  { %2288 = vst [vmem:[#allocation2 + $0x20] sm:$0xff] %v2256_v60  ;;  %v1814_v33 = vpop.permute.xlu2 %1813  ;;  %2007 = vrot.lane.b32.xlu0 %v4156_v18, %s2785_s3  ;;  %vm1430_vm6 = vcmp.eq.f32.partialorder %v4360_v44, 0.0  ;;  %v1479_v48 = vand.u32 2147483648, %v4430_v54  ;;  %vm1478_vm7 = vcmp.eq.f32.partialorder %v4430_v54, 0.0  ;;  %vm1464_vm8 = vcmp.eq.f32.partialorder %v4401_v46, inf }
 0x2c5   :  { %v1903_v28 = vadd.f32 %v1814_v33, %v4872_v37  ;;  %v1475_v41 = vmul.f32 %v1474_v12, %v4430_v54  ;;  %v4876_v33 = vld [vmem:[#allocation21_spill] sm:$0xff]  ;;  %v1463_v37 = vmul.f32 %v1462_v55, %v4401_v46  ;;  %vm1466_vm9 = vcmp.eq.f32.partialorder %v4401_v46, 0.0  ;;  %v4881_v55 = vld [vmem:[#allocation26_spill] sm:$0xff] }
 0x2c6   :  { %v4512_v17 = vpop.permute.xlu0 %1983  ;;  %vm1452_vm10 = vcmp.eq.f32.partialorder %v4444_v4, inf  ;;  %vm1454_vm11 = vcmp.eq.f32.partialorder %v4444_v4, 0.0 }
 0x2c7   :  { %v2192_v7 = vsel %vm2185_vm14, %v1903_v28, %v4133_v0  ;;  %2133 = vrot.lane.b32.xlu1 %v4401_v46, %s2785_s3  ;;  %v4873_v0 = vld [vmem:[#allocation13_spill] sm:$0xff] }
 0x2c8   :  { %v2225_v62 = vsel %vm2218_vm0, %v2192_v7, %v4449_v10  ;;  %v1812_v50 = vpop.permute.xlu1 %1811  ;;  %v1417_v10 = vsel %vm1416_vm2, %v4355_v5, %v1415_v63  ;;  %v1449_v5 = vsub.f32 1.5, %v1448_v25  ;;  %v4877_v7 = vld [vmem:[#allocation32_spill] sm:$0xff]  ;;  %v1455_v25 = vand.u32 2147483648, %v4444_v4 }
 0x2c9   :  { %v2258_v47 = vsel %vm2251_vm1, %v2225_v62, 0.0  ;;  %v1902_v42 = vadd.f32 %v1812_v50, %v4873_v0  ;;  %v1420_v36 = vsel %vm1418_vm4, %v1419_v45, %v1417_v10 }
 0x2ca   :  { %2290 = vst [vmem:[#allocation2 + $0x30] sm:$0xff] %v2258_v47  ;;  %2129 = vrot.lane.b32.xlu2 %v4329_v22, %s2785_s3  ;;  %v1429_v22 = vsel %vm1428_vm3, %v4360_v44, %v1427_v3  ;;  %v1755_v27 = vmul.f32 %v4876_v33, %v1420_v36  ;;  %v1450_v12 = vmul.f32 %v4489_v11, %v1449_v5  ;;  %v4878_v3 = vld [vmem:[#allocation30_spill] sm:$0xff] }
 0x2cb   :  { %v2191_v52 = vsel %vm2185_vm14, %v1902_v42, %v4064_v31  ;;  %v1432_v39 = vsel %vm1430_vm6, %v1431_v34, %v1429_v22  ;;  %v4879_v42 = vld [vmem:[#allocation34_spill] sm:$0xff] }
 0x2cc   :  { %v4538_v38 = vpop.permute.xlu2 %1987  ;;  %2131 = vrot.lane.b32.xlu0 %v4444_v4, %s2785_s3  ;;  %v2224_v57 = vsel %vm2218_vm0, %v2191_v52, %v4221_v32  ;;  %v1477_v32 = vsel %vm1476_vm5, %v4430_v54, %v1475_v41  ;;  %v1756_v43 = vmul.f32 %v4877_v7, %v1432_v39  ;;  %v1451_v11 = vmul.f32 %v1450_v12, %v4444_v4  ;;  %v4880_v52 = vld [vmem:[#allocation23_spill] sm:$0xff]  ;;  %v4884_v7 = vld [vmem:[#allocation33_spill] sm:$0xff] }
 0x2cd   :  { %v2257_v31 = vsel %vm2251_vm1, %v2224_v57, 0.0  ;;  %v1480_v15 = vsel %vm1478_vm7, %v1479_v48, %v1477_v32 }
 0x2ce   :  { %v1858_v60 = vpop.permute.xlu0 %1857  ;;  %2289 = vst [vmem:[#allocation2 + $0x28] sm:$0xff] %v2257_v31  ;;  %v1760_v51 = vmul.f32 %v4878_v3, %v1480_v15  ;;  %v1453_v10 = vsel %vm1452_vm10, %v4444_v4, %v1451_v11  ;;  %v4885_v3 = vld [vmem:[#allocation35_spill] sm:$0xff] }
 0x2cf   :  { %1841 = vrot.lane.b32.xlu1 %v1757_v58, %s2786_s13  ;;  %v1925_v14 = vadd.f32 %v1858_v60, %v4875_v24 }
 0x2d0   :  { %v4558_v28 = vpop.permute.xlu1 %1985 }
 0x2d1   :  { %v2214_v44 = vsel %vm2185_vm14, %v1925_v14, %v3849_v49  ;;  %v1465_v49 = vsel %vm1464_vm8, %v4401_v46, %v1463_v37 }
 0x2d2   :  { %1837 = vrot.lane.b32.xlu2 %v1755_v27, %s2786_s13  ;;  %v2247_v63 = vsel %vm2218_vm0, %v2214_v44, %v4363_v53  ;;  %v1467_v53 = vand.u32 2147483648, %v4401_v46  ;;  %v1456_v46 = vsel %vm1454_vm11, %v1455_v25, %v1453_v10 }
 0x2d3   :  { %v2280_v62 = vsel %vm2251_vm1, %v2247_v63, 0.0 }
 0x2d4   :  { %2312 = vst [vmem:[#allocation2 + $0xe0] sm:$0xff] %v2280_v62  ;;  %v4570_v59 = vpop.permute.xlu2 %1861  ;;  %1839 = vrot.lane.b32.xlu0 %v1756_v43, %s2786_s13  ;;  %v1468_v50 = vsel %vm1466_vm9, %v1467_v53, %v1465_v49 }
 0x2d5   :  { %v1759_v20 = vmul.f32 %v4879_v42, %v1468_v50 }
 0x2d6   :  { %v2108_v47 = vpop.permute.xlu0 %2107 }
 0x2d7   :  { %1847 = vrot.lane.b32.xlu1 %v1760_v51, %s2786_s13 }
 0x2d8   :  { %v4579_v0 = vpop.permute.xlu1 %1859 }
 0x2da   :  { %2135 = vrot.lane.b32.xlu2 %v4430_v54, %s2785_s3  ;;  %v1758_v54 = vmul.f32 %v4881_v55, %v1456_v46 }
 0x2dc   :  { %v2112_v45 = vpop.permute.xlu2 %2111  ;;  %1845 = vrot.lane.b32.xlu0 %v1759_v20, %s2786_s13 }
 0x2de   :  { %v1816_v41 = vpop.permute.xlu0 %1815 }
 0x2df   :  { %2151 = vrot.lane.b32.xlu1 %v3682_v9, %s2785_s3  ;;  %v1904_v22 = vadd.f32 %v1816_v41, %v4880_v52  ;;  %v4882_v9 = vld [vmem:[#allocation31_spill] sm:$0xff] }
 0x2e0   :  { %v2110_v57 = vpop.permute.xlu1 %2109 }
 0x2e1   :  { %v2193_v40 = vsel %vm2185_vm14, %v1904_v22, %v4026_v1 }
 0x2e2   :  { %1843 = vrot.lane.b32.xlu2 %v1758_v54, %s2786_s13  ;;  %v2226_v58 = vsel %vm2218_vm0, %v2193_v40, %v4492_v2  ;;  %v4883_v2 = vld [vmem:[#allocation25_spill] sm:$0xff] }
 0x2e3   :  { %v2259_v4 = vsel %vm2251_vm1, %v2226_v58, 0.0  ;;  %v4887_v58 = vld [vmem:[#allocation40_spill] sm:$0xff] }
 0x2e4   :  { %2291 = vst [vmem:[#allocation2 + $0x38] sm:$0xff] %v2259_v4  ;;  %v1820_v36 = vpop.permute.xlu2 %1819  ;;  %2149 = vrot.lane.b32.xlu0 %v3639_v16, %s2785_s3 }
 0x2e5   :  { %v1906_v34 = vadd.f32 %v1820_v36, %v4882_v9 }
 0x2e6   :  { %v1990_v31 = vpop.permute.xlu0 %1989 }
 0x2e7   :  { %v2195_v60 = vsel %vm2185_vm14, %v1906_v34, %v4405_v35 }
 0x2e8   :  { %v2228_v1 = vsel %vm2218_vm0, %v2195_v60, %v2108_v47 }
 0x2e9   :  { %v2261_v5 = vsel %vm2251_vm1, %v2228_v1, 0.0  ;;  %v1818_v24 = vpop.permute.xlu1 %1817 }
 0x2ea   :  { %2293 = vst [vmem:[#allocation2 + $0x48] sm:$0xff] %v2261_v5  ;;  %2147 = vrot.lane.b32.xlu2 %v3577_v56, %s2785_s3  ;;  %v1905_v14 = vadd.f32 %v1818_v24, %v4883_v2  ;;  %s2320_s3 = sshll.u32 %s2787_s4, 4  ;;  %s2321_s3 = int_to_ptr.vmem [resolvable:$true] %s2320_s3 }
 0x2ec   :  { %v2194_v16 = vsel %vm2185_vm14, %v1905_v14, %v4341_v21  ;;  %v4611_v32 = vpop.permute.xlu2 %1993 }
 0x2ed   :  { %v2227_v39 = vsel %vm2218_vm0, %v2194_v16, %v4482_v26 }
 0x2ee   :  { %v2260_v35 = vsel %vm2251_vm1, %v2227_v39, 0.0  ;;  %v4616_v33 = vpop.permute.xlu0 %1863 }
 0x2ef   :  { %2292 = vst [vmem:[#allocation2 + $0x40] sm:$0xff] %v2260_v35 }
 0x2f1   :  { %v1992_v27 = vpop.permute.xlu1 %1991 }
 0x2f4   :  { %v2118_v48 = vpop.permute.xlu2 %2117 }
 0x2f6   :  { %v2114_v37 = vpop.permute.xlu0 %2113 }
 0x2f9   :  { %v2116_v44 = vpop.permute.xlu1 %2115 }
 0x2fc   :  { %v1826_v56 = vpop.permute.xlu2 %1825 }
 0x2fd   :  { %v1909_v63 = vadd.f32 %v1826_v56, %v3704_v8 }
 0x2fe   :  { %v1822_v15 = vpop.permute.xlu0 %1821 }
 0x2ff   :  { %v2198_v21 = vsel %vm2185_vm14, %v1909_v63, %v4558_v28  ;;  %v1907_v43 = vadd.f32 %v1822_v15, %v4884_v7  ;;  %v4889_v15 = vld [vmem:[#allocation44_spill] sm:$0xff] }
 0x300   :  { %v2231_v26 = vsel %vm2218_vm0, %v2198_v21, %v2114_v37 }
 0x301   :  { %v2264_v12 = vsel %vm2251_vm1, %v2231_v26, 0.0  ;;  %v1824_v62 = vpop.permute.xlu1 %1823  ;;  %v2196_v49 = vsel %vm2185_vm14, %v1907_v43, %v4390_v29 }
 0x302   :  { %2296 = vst [vmem:[#allocation2 + $0x60] sm:$0xff] %v2264_v12  ;;  %v1908_v51 = vadd.f32 %v1824_v62, %v4885_v3  ;;  %v2229_v53 = vsel %vm2218_vm0, %v2196_v49, %v2110_v57 }
 0x303   :  { %v2262_v8 = vsel %vm2251_vm1, %v2229_v53, 0.0 }
 0x304   :  { %v2197_v28 = vsel %vm2185_vm14, %v1908_v51, %v4512_v17  ;;  %2294 = vst [vmem:[#allocation2 + $0x50] sm:$0xff] %v2262_v8  ;;  %v4631_v47 = vpop.permute.xlu2 %1999  ;;  %v4886_v17 = vld [vmem:[#allocation38_spill] sm:$0xff] }
 0x305   :  { %v2230_v11 = vsel %vm2218_vm0, %v2197_v28, %v2112_v45  ;;  %v4890_v28 = vld [vmem:[#allocation17_spill] sm:$0xff] }
 0x306   :  { %v2263_v50 = vsel %vm2251_vm1, %v2230_v11, 0.0  ;;  %v1996_v42 = vpop.permute.xlu0 %1995  ;;  %v1926_v11 = vadd.f32 %v4579_v0, %v4890_v28 }
 0x307   :  { %2295 = vst [vmem:[#allocation2 + $0x58] sm:$0xff] %v2263_v50 }
 0x309   :  { %v1998_v29 = vpop.permute.xlu1 %1997 }
 0x30c   :  { %v2124_v20 = vpop.permute.xlu2 %2123 }
 0x30e   :  { %v2120_v10 = vpop.permute.xlu0 %2119 }
 0x311   :  { %v2122_v25 = vpop.permute.xlu1 %2121 }
 0x314   :  { %v1832_v46 = vpop.permute.xlu2 %1831 }
 0x315   :  { %v1912_v41 = vadd.f32 %v1832_v46, %v3816_v19 }
 0x316   :  { %v1828_v52 = vpop.permute.xlu0 %1827 }
 0x317   :  { %v2201_v22 = vsel %vm2185_vm14, %v1912_v41, %v1992_v27  ;;  %v1910_v55 = vadd.f32 %v1828_v52, %v4886_v17 }
 0x318   :  { %v2234_v54 = vsel %vm2218_vm0, %v2201_v22, %v2120_v10 }
 0x319   :  { %v2267_v45 = vsel %vm2251_vm1, %v2234_v54, 0.0  ;;  %v1830_v57 = vpop.permute.xlu1 %1829  ;;  %v2199_v40 = vsel %vm2185_vm14, %v1910_v55, %v4538_v38 }
 0x31a   :  { %2299 = vst [vmem:[#allocation2 + $0x78] sm:$0xff] %v2267_v45  ;;  %v1911_v4 = vadd.f32 %v1830_v57, %v4887_v58  ;;  %v2232_v36 = vsel %vm2218_vm0, %v2199_v40, %v2116_v44 }
 0x31b   :  { %v2265_v19 = vsel %vm2251_vm1, %v2232_v36, 0.0 }
 0x31c   :  { %v2200_v9 = vsel %vm2185_vm14, %v1911_v4, %v1990_v31  ;;  %2297 = vst [vmem:[#allocation2 + $0x68] sm:$0xff] %v2265_v19  ;;  %v4646_v34 = vpop.permute.xlu2 %2005  ;;  %v4888_v31 = vld [vmem:[#allocation43_spill] sm:$0xff] }
 0x31d   :  { %v2233_v60 = vsel %vm2218_vm0, %v2200_v9, %v2118_v48  ;;  %v4892_v4 = vld [vmem:[#allocation27_spill] sm:$0xff] }
 0x31e   :  { %v2266_v1 = vsel %vm2251_vm1, %v2233_v60, 0.0  ;;  %v2002_v5 = vpop.permute.xlu0 %2001  ;;  %v1928_v36 = vadd.f32 %v4616_v33, %v4892_v4 }
 0x31f   :  { %2298 = vst [vmem:[#allocation2 + $0x70] sm:$0xff] %v2266_v1 }
 0x321   :  { %v2004_v24 = vpop.permute.xlu1 %2003 }
 0x324   :  { %v2130_v38 = vpop.permute.xlu2 %2129 }
 0x326   :  { %v2126_v2 = vpop.permute.xlu0 %2125 }
 0x329   :  { %v2128_v14 = vpop.permute.xlu1 %2127 }
 0x32c   :  { %v1838_v16 = vpop.permute.xlu2 %1837 }
 0x32d   :  { %v1915_v39 = vadd.f32 %v1838_v16, %v4001_v6 }
 0x32e   :  { %v1834_v35 = vpop.permute.xlu0 %1833 }
 0x32f   :  { %v2204_v27 = vsel %vm2185_vm14, %v1915_v39, %v1998_v29  ;;  %v1913_v37 = vadd.f32 %v1834_v35, %v4888_v31 }
 0x330   :  { %v2237_v44 = vsel %vm2218_vm0, %v2204_v27, %v2126_v2 }
 0x331   :  { %v2270_v48 = vsel %vm2251_vm1, %v2237_v44, 0.0  ;;  %v1836_v56 = vpop.permute.xlu1 %1835  ;;  %v2202_v63 = vsel %vm2185_vm14, %v1913_v37, %v4611_v32 }
 0x332   :  { %2302 = vst [vmem:[#allocation2 + $0x90] sm:$0xff] %v2270_v48  ;;  %v1914_v21 = vadd.f32 %v1836_v56, %v4889_v15  ;;  %v2235_v7 = vsel %vm2218_vm0, %v2202_v63, %v2122_v25  ;;  %v4891_v25 = vld [vmem:[#allocation45_spill] sm:$0xff] }
 0x333   :  { %v2268_v6 = vsel %vm2251_vm1, %v2235_v7, 0.0  ;;  %v2215_v46 = vsel %vm2185_vm14, %v1926_v11, %v4891_v25 }
 0x334   :  { %v2203_v43 = vsel %vm2185_vm14, %v1914_v21, %v1996_v42  ;;  %2300 = vst [vmem:[#allocation2 + $0x80] sm:$0xff] %v2268_v6  ;;  %v2136_v26 = vpop.permute.xlu2 %2135 }
 0x335   :  { %v2236_v12 = vsel %vm2218_vm0, %v2203_v43, %v2124_v20 }
 0x336   :  { %v2269_v62 = vsel %vm2251_vm1, %v2236_v12, 0.0  ;;  %v2008_v49 = vpop.permute.xlu0 %2007 }
 0x337   :  { %2301 = vst [vmem:[#allocation2 + $0x88] sm:$0xff] %v2269_v62 }
 0x339   :  { %v2134_v3 = vpop.permute.xlu1 %2133 }
 0x33c   :  { %v1844_v51 = vpop.permute.xlu2 %1843 }
 0x33d   :  { %v1918_v32 = vadd.f32 %v1844_v51, %v4174_v23 }
 0x33e   :  { %v2132_v53 = vpop.permute.xlu0 %2131 }
 0x33f   :  { %v2207_v8 = vsel %vm2185_vm14, %v1918_v32, %v2004_v24  ;;  %v4894_v24 = vld [vmem:[#allocation20_spill] sm:$0xff] }
 0x340   :  { %v2240_v50 = vsel %vm2218_vm0, %v2207_v8, %v2132_v53 }
 0x341   :  { %v1842_v42 = vpop.permute.xlu1 %1841  ;;  %v2273_v29 = vsel %vm2251_vm1, %v2240_v50, 0.0 }
 0x342   :  { %v1917_v20 = vadd.f32 %v1842_v42, %v4037_v61  ;;  %2305 = vst [vmem:[#allocation2 + $0xa8] sm:$0xff] %v2273_v29 }
 0x344   :  { %v2206_v10 = vsel %vm2185_vm14, %v1917_v20, %v2002_v5  ;;  %v2148_v23 = vpop.permute.xlu2 %2147 }
 0x345   :  { %v2239_v41 = vsel %vm2218_vm0, %v2206_v10, %v2130_v38  ;;  %v2248_v52 = vsel %vm2218_vm0, %v2215_v46, %v2148_v23  ;;  %v1927_v38 = vadd.f32 %v4570_v59, %v4894_v24 }
 0x346   :  { %v2272_v0 = vsel %vm2251_vm1, %v2239_v41, 0.0  ;;  %v2281_v22 = vsel %vm2251_vm1, %v2248_v52, 0.0  ;;  %v1840_v17 = vpop.permute.xlu0 %1839 }
 0x347   :  { %2304 = vst [vmem:[#allocation2 + $0xa0] sm:$0xff] %v2272_v0  ;;  %v1916_v55 = vadd.f32 %v1840_v17, %v4023_v13 }
 0x348   :  { %2313 = vst [vmem:[#allocation2 + $0xe8] sm:$0xff] %v2281_v22 }
 0x349   :  { %v1848_v61 = vpop.permute.xlu1 %1847  ;;  %v2205_v54 = vsel %vm2185_vm14, %v1916_v55, %v4631_v47 }
 0x34a   :  { %v1920_v45 = vadd.f32 %v1848_v61, %v4156_v18  ;;  %v2238_v57 = vsel %vm2218_vm0, %v2205_v54, %v2128_v14  ;;  %v4893_v18 = vld [vmem:[#allocation5_spill] sm:$0xff] }
 0x34b   :  { %v2271_v40 = vsel %vm2251_vm1, %v2238_v57, 0.0  ;;  %v2217_v1 = vsel %vm2185_vm14, %v1928_v36, %v4893_v18 }
 0x34c   :  { %v2209_v58 = vsel %vm2185_vm14, %v1920_v45, %v2008_v49  ;;  %2303 = vst [vmem:[#allocation2 + $0x98] sm:$0xff] %v2271_v40 }
 0x34d   :  { %v2242_v19 = vsel %vm2218_vm0, %v2209_v58, %v2136_v26 }
 0x34e   :  { %v2275_v13 = vsel %vm2251_vm1, %v2242_v19, 0.0  ;;  %v1846_v9 = vpop.permute.xlu0 %1845 }
 0x34f   :  { %2307 = vst [vmem:[#allocation2 + $0xb8] sm:$0xff] %v2275_v13  ;;  %v1919_v47 = vadd.f32 %v1846_v9, %v4131_v30 }
 0x351   :  { %v2152_v60 = vpop.permute.xlu1 %2151  ;;  %v2208_v5 = vsel %vm2185_vm14, %v1919_v47, %v4646_v34  ;;  %v4895_v34 = vld [vmem:[#allocation16_spill] sm:$0xff] }
 0x352   :  { %v2250_v33 = vsel %vm2218_vm0, %v2217_v1, %v2152_v60  ;;  %v2241_v2 = vsel %vm2218_vm0, %v2208_v5, %v2134_v3  ;;  %v2216_v59 = vsel %vm2185_vm14, %v1927_v38, %v4895_v34 }
 0x353   :  { %v2283_v14 = vsel %vm2251_vm1, %v2250_v33, 0.0  ;;  %v2274_v16 = vsel %vm2251_vm1, %v2241_v2, 0.0 }
 0x354   :  { %2315 = vst [vmem:[#allocation2 + $0xf8] sm:$0xff] %v2283_v14 }
 0x355   :  { %2306 = vst [vmem:[#allocation2 + $0xb0] sm:$0xff] %v2274_v16 }
 0x356   :  { %v2150_v30 = vpop.permute.xlu0 %2149 }
 0x357   :  { %v2249_v39 = vsel %vm2218_vm0, %v2216_v59, %v2150_v30 }
 0x358   :  { %v2282_v35 = vsel %vm2251_vm1, %v2249_v39, 0.0 }
 0x359   :  { %2314 = vst [vmem:[#allocation2 + $0xf0] sm:$0xff] %v2282_v35 }
 0x35a   :  { %2328 = dma.vmem_to_hbm [thread:$0]  %s2321_s3, 4096, %s2323_s18, [#allocation3], %s2788_s19, %s2788_s19, %s2789_s20  }
 0x35b   :  { %2783 = dma.done.wait [#allocation3], 4096  }
 0x35c   :  { %2784 = vsyncadd [#allocation3], 4294963200 }
 0x35d   :  { %2333 = vsyncpa [#allocation3], 1 }

</bundles_post_ra>
